<compile_context>
chip_gen: v6e
topology: v6e:2x2x1
jax: 0.10.0
libtpu: 0.0.40
codegen_flags: <defaults>
</compile_context>

<pallas_src>
import math

import jax
import jax.numpy as jnp
from jax.experimental import pallas as pl
from jax.experimental.pallas import tpu as pltpu


def _make_embeddings_kernel(eps):
    def kernel(ids_ref, word_ref, pe_ref, gamma_ref, beta_ref, out_ref):
        # ids_ref   : (1, T, 1) int32 token ids for this (tile, batch) step
        # word_ref  : (V, H) word-embedding table (bf16), VMEM resident (constant block)
        # pe_ref    : (T, H) positional-embedding rows for this tile (f32)
        # gamma/beta: (1, H) LayerNorm affine params
        # out_ref   : (1, T, H) output slab
        ids = ids_ref[0]                                    # (T, 1) int32
        tile_t = ids.shape[0]
        vocab = word_ref.shape[0]

        # One-hot gather on the MXU. Out-of-range ids produce an all-zero row; the
        # padding_idx=0 row is zeroed in the table, matching nn.Embedding behavior.
        vocab_iota = jax.lax.broadcasted_iota(jnp.int32, (tile_t, vocab), 1)
        one_hot = (vocab_iota == ids).astype(word_ref.dtype)            # (T, V)
        gathered = jnp.dot(one_hot, word_ref[...],
                           preferred_element_type=jnp.float32)          # (T, H), exact rows

        x = gathered + pe_ref[...].astype(jnp.float32)                  # (T, H) f32
        h = x.shape[-1]
        inv_h = 1.0 / h
        mean = jnp.sum(x, axis=-1, keepdims=True) * inv_h
        mean_sq = jnp.sum(x * x, axis=-1, keepdims=True) * inv_h
        var = mean_sq - mean * mean                                      # single-pass variance
        y = (x - mean) * jax.lax.rsqrt(var + eps)
        y = y * gamma_ref[...].astype(jnp.float32) + beta_ref[...].astype(jnp.float32)
        # Dropout omitted (inference mode / identity).
        out_ref[0, :, :] = y.astype(out_ref.dtype)                      # one lane-dense store

    return kernel


def _pick_tile(seq_len, batch, max_tile=512, min_grid_steps=2):
    """Largest 8-aligned divisor of seq_len <= max_tile, shrunk only to keep >= 2 grid steps."""
    cands = [c for c in range(min(max_tile, seq_len), 0, -1)
             if seq_len % c == 0 and c % 8 == 0]
    if not cands:
        return seq_len          # full-extent block satisfies the layout rule
    for c in cands:             # descending: first hit = largest tile with enough grid steps
        if batch * (seq_len // c) >= min_grid_steps:
            return c
    return cands[0]


def _vmem_limit_bytes(V, H, T, *, table_itemsize, out_itemsize):
    table = 2 * V * H * table_itemsize            # constant block (still double-buffered)
    pe = 2 * T * H * 4
    out = 2 * T * H * out_itemsize
    ids = 2 * T * 128 * 4                         # (T, 1) int32 tile, lane-padded
    affine = 2 * 2 * H * 4
    onehot = 2 * T * V * table_itemsize           # transient one-hot operand
    work = 6 * T * H * 4                          # f32 LN temporaries / gathered slab
    need = table + pe + out + ids + affine + onehot + work + (4 << 20)
    if need > (64 << 20):                         # 64 MiB = physical VMEM on v7x
        raise ValueError(
            "word-embedding table / one-hot tile exceeds the VMEM budget; use the "
            "HBM-resident DMA-gather path (see TODO) or shrink max_tile/vocab")
    return int(min(max(need, 16 << 20), 64 << 20))


def embeddings_forward(input_ids, word_table, pe_table, gamma, beta, *,
                       eps=1e-12, max_tile=512, out_dtype=jnp.float32):
    """Pallas forward: word_table[input_ids] + PE[:S] -> LayerNorm."""
    B, S = input_ids.shape
    V, H = word_table.shape
    if pe_table.shape[0] < S:
        raise ValueError("sequence length exceeds positional-embedding max_len")

    T = _pick_tile(S, B, max_tile=max_tile)
    n_tiles = S // T

    ids3d = input_ids.astype(jnp.int32).reshape(B, S, 1)   # (T,1) tiles -> 8/128-rule safe
    pe_sliced = pe_table[:S].astype(jnp.float32)            # (S, H), S divisible by T
    gamma2d = gamma.reshape(1, H).astype(jnp.float32)
    beta2d = beta.reshape(1, H).astype(jnp.float32)

    vmem_limit = _vmem_limit_bytes(
        V, H, T,
        table_itemsize=jnp.dtype(word_table.dtype).itemsize,
        out_itemsize=jnp.dtype(out_dtype).itemsize)

    grid_spec = pltpu.PrefetchScalarGridSpec(
        num_scalar_prefetch=0,
        grid=(n_tiles, B),            # token-tile axis outer -> PE block fetched once per tile
        in_specs=[
            pl.BlockSpec((1, T, 1), lambda t, b: (b, t, 0)),   # token ids for this step
            pl.BlockSpec((V, H), lambda t, b: (0, 0)),         # VMEM-resident word table
            pl.BlockSpec((T, H), lambda t, b: (t, 0)),         # contiguous PE rows
            pl.BlockSpec((1, H), lambda t, b: (0, 0)),         # gamma
            pl.BlockSpec((1, H), lambda t, b: (0, 0)),         # beta
        ],
        out_specs=pl.BlockSpec((1, T, H), lambda t, b: (b, t, 0)),
    )

    return pl.pallas_call(
        _make_embeddings_kernel(eps),
        out_shape=jax.ShapeDtypeStruct((B, S, H), out_dtype),
        grid_spec=grid_spec,
        compiler_params=pltpu.CompilerParams(
            dimension_semantics=("parallel", "parallel"),
            vmem_limit_bytes=vmem_limit,
        ),
    )(ids3d, word_table, pe_sliced, gamma2d, beta2d)


def make_sinusoidal_pe(max_len, d_model):
    """Matches PositionalEmbedding.__init__ exactly."""
    position = jnp.arange(0, max_len, dtype=jnp.float32)[:, None]            # [L, 1]
    div_term = jnp.exp(
        jnp.arange(0, d_model, 2, dtype=jnp.float32) * -(math.log(10000.0) / d_model)
    )                                                                         # [H/2]
    pe = jnp.zeros((max_len, d_model), dtype=jnp.float32)
    pe = pe.at[:, 0::2].set(jnp.sin(position * div_term))
    pe = pe.at[:, 1::2].set(jnp.cos(position * div_term))
    return pe


def ref_forward(input_ids, word_table, pe_table, gamma, beta, eps=1e-12):
    """Pure-JAX reference mirroring the PyTorch forward."""
    S = input_ids.shape[1]
    w = word_table[input_ids]                      # [B, S, H]
    p = pe_table[None, :S, :]                      # [1, S, H]
    x = w + p
    mean = x.mean(-1, keepdims=True)
    var = ((x - mean) ** 2).mean(-1, keepdims=True)
    y = (x - mean) / jnp.sqrt(var + eps)
    return y * gamma + beta


if __name__ == "__main__":
    # Small, tile-aligned shapes consistent with the module.
    B, S = 2, 256
    VOCAB, MAX_LEN, H = 512, 512, 128
    EPS = 1e-12
    PAD = 0  # Constants.PAD

    key = jax.random.PRNGKey(0)
    k_ids, k_emb, k_gamma, k_beta = jax.random.split(key, 4)

    input_ids = jax.random.randint(k_ids, (B, S), minval=1, maxval=VOCAB, dtype=jnp.int32)

    # nn.Embedding(vocab, H, padding_idx=PAD): normal init, padding row zeroed.
    # Weights stored in bf16 for TPU deployment (halves the VMEM-resident table / HBM fill);
    # the one-hot MXU gather reproduces these bf16 weights exactly.
    word_table = jax.random.normal(k_emb, (VOCAB, H), dtype=jnp.float32)
    word_table = word_table.at[PAD].set(0.0).astype(jnp.bfloat16)

    pe_table = make_sinusoidal_pe(MAX_LEN, H)

    # LayerNorm params (init weight=1, bias=0 in PyTorch; perturb slightly for a real test).
    gamma = 1.0 + 0.01 * jax.random.normal(k_gamma, (H,), dtype=jnp.float32)
    beta = 0.01 * jax.random.normal(k_beta, (H,), dtype=jnp.float32)

    out = embeddings_forward(input_ids, word_table, pe_table, gamma, beta, eps=EPS)
    out = jax.block_until_ready(out)

    ref = ref_forward(input_ids, word_table.astype(jnp.float32), pe_table, gamma, beta, eps=EPS)
    assert out.shape == (B, S, H)
    assert out.dtype == jnp.float32
    assert jnp.allclose(out, ref, atol=1e-5, rtol=1e-5), "Pallas output mismatch vs reference"

    print("KERNEL_OK")
</pallas_src>

<mosaic_0001>
module attributes {stable_mosaic.version = 11 : i64} {
  func.func @kernel(%arg0: i32, %arg1: i32, %arg2: memref<1x256x1xi32, #tpu.memory_space<vmem>>, %arg3: memref<512x128xbf16, #tpu.memory_space<vmem>>, %arg4: memref<256x128xf32, #tpu.memory_space<vmem>>, %arg5: memref<1x128xf32, #tpu.memory_space<vmem>>, %arg6: memref<1x128xf32, #tpu.memory_space<vmem>>, %arg7: memref<1x256x128xf32, #tpu.memory_space<vmem>>) attributes {dimension_semantics = [#tpu.dimension_semantics<parallel>, #tpu.dimension_semantics<parallel>], iteration_bounds = array<i64: 1, 2>, scalar_prefetch = 0 : i64, scratch_operands = 0 : i64, tpu.core_type = #tpu.core_type<tc>, window_params = [{transform_indices = @transform_0, window_bounds = array<i64: 1, 256, 1>}, {pipeline_mode = #tpu.pipeline_mode<synchronous>, transform_indices = @transform_1, window_bounds = array<i64: 512, 128>}, {transform_indices = @transform_2, window_bounds = array<i64: 256, 128>}, {pipeline_mode = #tpu.pipeline_mode<synchronous>, transform_indices = @transform_3, window_bounds = array<i64: 1, 128>}, {pipeline_mode = #tpu.pipeline_mode<synchronous>, transform_indices = @transform_4, window_bounds = array<i64: 1, 128>}, {transform_indices = @transform_5, window_bounds = array<i64: 1, 256, 128>}]} {
    %c0 = arith.constant 0 : index
    %c0_0 = arith.constant 0 : index
    %c0_1 = arith.constant 0 : index
    %0 = vector.load %arg2[%c0, %c0_0, %c0_1] : memref<1x256x1xi32, #tpu.memory_space<vmem>>, vector<1x256x1xi32>
    %1 = vector.shape_cast %0 : vector<1x256x1xi32> to vector<256x1xi32>
    %2 = tpu.iota {dimensions = array<i32: 1>} : vector<256x512xi32>
    %3 = vector.broadcast %1 : vector<256x1xi32> to vector<256x512xi32>
    %4 = arith.cmpi eq, %2, %3 : vector<256x512xi32>
    %5 = arith.extui %4 : vector<256x512xi1> to vector<256x512xi32>
    %6 = arith.sitofp %5 : vector<256x512xi32> to vector<256x512xf32>
    %7 = arith.truncf %6 : vector<256x512xf32> to vector<256x512xbf16>
    %c0_2 = arith.constant 0 : index
    %c0_3 = arith.constant 0 : index
    %8 = vector.load %arg3[%c0_2, %c0_3] : memref<512x128xbf16, #tpu.memory_space<vmem>>, vector<512x128xbf16>
    %cst = arith.constant dense<0.000000e+00> : vector<256x128xf32>
    %9 = tpu.matmul %7, %8, %cst {dimension_numbers = #tpu.dot_dimension_numbers<[1], [0], [0], [1], [0, 0, 1, 1], [], []>} : vector<256x512xbf16>, vector<512x128xbf16>, vector<256x128xf32> -> vector<256x128xf32>
    %c0_4 = arith.constant 0 : index
    %c0_5 = arith.constant 0 : index
    %10 = vector.load %arg4[%c0_4, %c0_5] : memref<256x128xf32, #tpu.memory_space<vmem>>, vector<256x128xf32>
    %11 = arith.addf %9, %10 : vector<256x128xf32>
    %cst_6 = arith.constant dense<0.000000e+00> : vector<256xf32>
    %12 = vector.multi_reduction <add>, %11, %cst_6 [1] : vector<256x128xf32> to vector<256xf32>
    %13 = vector.shape_cast %12 : vector<256xf32> to vector<256x1xf32>
    %cst_7 = arith.constant 7.812500e-03 : f32
    %14 = vector.broadcast %cst_7 : f32 to vector<256x1xf32>
    %15 = arith.mulf %13, %14 : vector<256x1xf32>
    %16 = arith.mulf %11, %11 : vector<256x128xf32>
    %cst_8 = arith.constant dense<0.000000e+00> : vector<256xf32>
    %17 = vector.multi_reduction <add>, %16, %cst_8 [1] : vector<256x128xf32> to vector<256xf32>
    %18 = vector.shape_cast %17 : vector<256xf32> to vector<256x1xf32>
    %cst_9 = arith.constant 7.812500e-03 : f32
    %19 = vector.broadcast %cst_9 : f32 to vector<256x1xf32>
    %20 = arith.mulf %18, %19 : vector<256x1xf32>
    %21 = arith.mulf %15, %15 : vector<256x1xf32>
    %22 = arith.subf %20, %21 : vector<256x1xf32>
    %23 = vector.broadcast %15 : vector<256x1xf32> to vector<256x128xf32>
    %24 = arith.subf %11, %23 : vector<256x128xf32>
    %cst_10 = arith.constant 9.99999996E-13 : f32
    %25 = vector.broadcast %cst_10 : f32 to vector<256x1xf32>
    %26 = arith.addf %22, %25 : vector<256x1xf32>
    %27 = math.rsqrt %26 : vector<256x1xf32>
    %28 = vector.broadcast %27 : vector<256x1xf32> to vector<256x128xf32>
    %29 = arith.mulf %24, %28 : vector<256x128xf32>
    %c0_11 = arith.constant 0 : index
    %c0_12 = arith.constant 0 : index
    %30 = vector.load %arg5[%c0_11, %c0_12] : memref<1x128xf32, #tpu.memory_space<vmem>>, vector<1x128xf32>
    %31 = vector.broadcast %30 : vector<1x128xf32> to vector<256x128xf32>
    %32 = arith.mulf %29, %31 : vector<256x128xf32>
    %c0_13 = arith.constant 0 : index
    %c0_14 = arith.constant 0 : index
    %33 = vector.load %arg6[%c0_13, %c0_14] : memref<1x128xf32, #tpu.memory_space<vmem>>, vector<1x128xf32>
    %34 = vector.broadcast %33 : vector<1x128xf32> to vector<256x128xf32>
    %35 = arith.addf %32, %34 : vector<256x128xf32>
    %c0_15 = arith.constant 0 : index
    %c0_16 = arith.constant 0 : index
    %c0_17 = arith.constant 0 : index
    %36 = vector.load %arg7[%c0_15, %c0_16, %c0_17] : memref<1x256x128xf32, #tpu.memory_space<vmem>>, vector<1x256x128xf32>
    %37 = vector.shape_cast %36 : vector<1x256x128xf32> to vector<256x128xf32>
    %38 = vector.shape_cast %35 : vector<256x128xf32> to vector<1x256x128xf32>
    tpu.vector_store %arg7[%c0_15, %c0_16, %c0_17], %38 {strides = array<i32>} : memref<1x256x128xf32, #tpu.memory_space<vmem>>, vector<1x256x128xf32>,
    return
  }
  func.func @transform_0(%arg0: i32, %arg1: i32) -> (i32, i32, i32) {
    %c0_i32 = arith.constant 0 : i32
    %c0_i32_0 = arith.constant 0 : i32
    return %arg1, %arg0, %c0_i32 : i32, i32, i32
  }
  func.func @transform_1(%arg0: i32, %arg1: i32) -> (i32, i32) {
    %c0_i32 = arith.constant 0 : i32
    %c0_i32_0 = arith.constant 0 : i32
    %c0_i32_1 = arith.constant 0 : i32
    return %c0_i32, %c0_i32_0 : i32, i32
  }
  func.func @transform_2(%arg0: i32, %arg1: i32) -> (i32, i32) {
    %c0_i32 = arith.constant 0 : i32
    %c0_i32_0 = arith.constant 0 : i32
    return %arg0, %c0_i32 : i32, i32
  }
  func.func @transform_3(%arg0: i32, %arg1: i32) -> (i32, i32) {
    %c0_i32 = arith.constant 0 : i32
    %c0_i32_0 = arith.constant 0 : i32
    %c0_i32_1 = arith.constant 0 : i32
    return %c0_i32, %c0_i32_0 : i32, i32
  }
  func.func @transform_4(%arg0: i32, %arg1: i32) -> (i32, i32) {
    %c0_i32 = arith.constant 0 : i32
    %c0_i32_0 = arith.constant 0 : i32
    %c0_i32_1 = arith.constant 0 : i32
    return %c0_i32, %c0_i32_0 : i32, i32
  }
  func.func @transform_5(%arg0: i32, %arg1: i32) -> (i32, i32, i32) {
    %c0_i32 = arith.constant 0 : i32
    %c0_i32_0 = arith.constant 0 : i32
    return %arg1, %arg0, %c0_i32 : i32, i32, i32
  }
}

</mosaic_0001>

<bundles_post_ra>
// kernel: tpu_custom_call.1
= control target key start
LH: loop header
LB: loop body
LE: loop exit
PB: predicated region body
PF: predicated region fallthrough
CT: control target
= control target key end

     0   :  { %10 = vsyncpa [#allocation3], 0  ;;  %s3882_s0 = inlined_call_operand.vmem [shape: s32[2,256,1], index: 0, kind: input, shape index: {}]   ;;  %s3883_s1 = inlined_call_operand.vmem [shape: bf16[512,128], index: 1, kind: input, shape index: {}]   ;;  %s3884_s2 = inlined_call_operand.vmem [shape: f32[256,128], index: 2, kind: input, shape index: {}]   ;;  %s3885_s3 = inlined_call_operand.vmem [shape: f32[1,128], index: 3, kind: input, shape index: {}]   ;;  %s3886_s4 = inlined_call_operand.vmem [shape: f32[1,128], index: 4, kind: input, shape index: {}]   ;;  %s3887_s5 = inlined_call_operand.hbm [shape: f32[2,256,128], index: 5, kind: output, shape index: {}]  }
   0x1   :  { %12 = vsyncpa [#allocation3 + $0x1], 0  ;;  %s2904_s18 = smov 0   ;;  %s2906_s19 = smov 0  }
   0x2   :  { %s2908_s20 = smov 0   ;;  %s2910_s21 = smov 0  }
   0x3   :  { %s2912_s22 = smov 0   ;;  %s2914_s23 = smov 0  }
   0x4 LB: > { %s2104_s24 = sadd.s32 4294967295, %s2867_s23   ;;  %s2105_s25 = sadd.s32 4294967294, %s2867_s23   ;;  %s2867_s23 = sphi %s2914_s23, %s18_s23   ;;  %s2863_s22 = sphi %s2912_s22, %s3894_s22   ;;  %s2859_s21 = sphi %s2910_s21, %s3893_s21   ;;  %s2855_s20 = sphi %s2908_s20, %s3892_s20   ;;  %s2851_s19 = sphi %s2906_s19, %s3891_s19   ;;  %s2847_s18 = sphi %s2904_s18, %s3890_s18  }
   0x5   : > { %s27_s26 = sadd.s32 1, %s2863_s22  ;;  %s156_s27 = sadd.s32 1, %s2855_s20 }
   0x6   : > { %p28_p0 = scmp.ge.s32.totalorder %s27_s26, 2  ;;  %p166_p1 = scmp.ne.s32.totalorder %s2855_s20, %s2851_s19 }
   0x7   : > { %p167_p2 = scmp.eq.s32.totalorder %s2104_s24, 1  ;;  %p172_p3 = scmp.ne.s32.totalorder %s2851_s19, %s2847_s18 }
   0x8   : > { %s3896_s26 = smov (%p28_p0, %s27_s26), 0  ;;  %p173_p5 = scmp.eq.s32.totalorder %s2105_s25, 1 }
   0x9   : > { %p2944_p4 = por %p167_p2, %p166_p1  ;;  %s151_s29 = ssub.s32 %s2863_s22, %s3896_s26 }
   0xa   : > { %p2109_p6 = scmp.ge.s32.totalorder %s2867_s23, 1  ;;  %p154_p7 = scmp.eq.s32.totalorder %s151_s29, 0 }
   0xb   : > { %p2951_p8 = por %p173_p5, %p172_p3  ;;  %p222_p9 = scmp.lt.s32.totalorder %s2867_s23, 3 }
   0xc   : > { %s2957_s6 = scalar_select %p154_p7, %s2855_s20, %s156_s27  }
   0xd   : > { %p223_p10 = pnand %p2109_p6, %p222_p9 }
   0xe   : > { %p260_p11 = scmp.lt.s32.totalorder (!%p223_p10), %s2859_s21, 1  ;;  %s256_s8 = sand.u32 (!%p223_p10), 1, %s2851_s19  }
   0xf   : > { %226 = sbr.rel (%p223_p10) target bundleno = 666 (0x29a), region = 40  ;;  %s2110_s11 = sshll.u32 (!%p223_p10), %s256_s8, 8 }
  0x10   : > { %s2409_s15 = sshll.u32 (!%p223_p10), %s2859_s21, 12  ;;  %s3837_s27 = scalar_lea.sflag (!%p223_p10), [#allocation3], %s256_s8 }
  0x11   : > { %s2871_s29 = smov (!%p223_p10), [#allocation2]  }
  0x12   : > { %s2795_s7 = sshll.u32 (!%p223_p10), %s2871_s29, 4  ;;  %s2796_s7 = int_to_ptr.vmem [resolvable:$false] %s2795_s7 }
  0x14   : > { %v2869_v0 = vmov 0   ;;  %v2695_v1 = vld [vmem:[%s3883_s1 + $0x78] sm:$0xff]   ;;  %s261_s9 = scalar_select %p260_p11, %s2859_s21, 1  ;;  %v2699_v5 = vld [vmem:[%s3883_s1 + $0x70] sm:$0xff]   ;;  %v2703_v19 = vld [vmem:[%s3883_s1 + $0x68] sm:$0xff]  }
  0x15   : > { %2694 = vset.pattern.permute.xlu1 %v2869_v0  ;;  %2693 = vset.pattern.permute.xlu0 %v2869_v0  ;;  %v2696_v2 = vld [vmem:[%s3883_s1 + $0xf8] sm:$0xff]   ;;  %v2700_v14 = vld [vmem:[%s3883_s1 + $0xf0] sm:$0xff]   ;;  %v2704_v20 = vld [vmem:[%s3883_s1 + $0xe8] sm:$0xff]  }
  0x16   : > { %2410 = vmatprep.subr.bf16.mxu0 %v2695_v1  ;;  %v2697_v3 = vld [vmem:[%s3883_s1 + $0x38] sm:$0xff]   ;;  %s2408_s14 = sshll.u32 %s261_s9, 8  ;;  %2522 = vmatprep.subr.bf16.mxu1 %v2696_v2  ;;  %v2701_v15 = vld [vmem:[%s3883_s1 + $0x30] sm:$0xff]   ;;  %v2705_v21 = vld [vmem:[%s3883_s1 + $0x28] sm:$0xff]   ;;  %v309_v1 = vlaneseq  ;;  %s2797_s9 = scalar_lea.vmem %s2796_s7, 8192 }
  0x17   : > { %v2698_v4 = vld [vmem:[%s3883_s1 + $0xb8] sm:$0xff]   ;;  %s2976_s25 = scalar_lea.vmem %s3882_s0, %s2408_s14  ;;  %2411 = vmatpush3.bf16.msra.mxu0 %v2697_v3  ;;  %v2702_v18 = vld [vmem:[%s3883_s1 + $0xb0] sm:$0xff]   ;;  %v2706_v24 = vld [vmem:[%s3883_s1 + $0xa8] sm:$0xff]   ;;  %s3584_s14 = scalar_lea.vmem [#allocation2], %s2110_s11 }
  0x18   : > { %v279_v6 = vld [vmem:[%s2976_s25 + $0x10] sm:$0xff]  ;;  %v277_v7 = vld [vmem:[%s2976_s25] sm:$0xff]  ;;  %2523 = vmatpush3.bf16.msra.mxu1 %v2698_v4  ;;  %v280_v8 = vld [vmem:[%s2976_s25 + $0x18] sm:$0xff]  ;;  %2412 = vmatprep.subr.bf16.mxu0 %v2699_v5  ;;  %v3094_v2 = vand.u32 127, %v309_v1  ;;  %s2010_s16 = sshll.u32 %s3584_s14, 4  ;;  %s3831_s16 = int_to_ptr.vmem [resolvable:$true] %s2010_s16 }
  0x19   : > { %321 = vperm.xlu1 %2694, %v279_v6   ;;  %315 = vperm.xlu0 %2693, %v277_v7   ;;  %v278_v9 = vld [vmem:[%s2976_s25 + $0x8] sm:$0xff]  ;;  %v281_v11 = vld [vmem:[%s2976_s25 + $0x20] sm:$0xff]  ;;  %v284_v12 = vld [vmem:[%s2976_s25 + $0x38] sm:$0xff]  ;;  %s2791_s21 = scalar_lea.vmem %s3831_s16, 4096  ;;  %p2798_p1 = scmp.lt.s32.totalorder %s3831_s16, %s2796_s7 }
  0x1a   : > { %v282_v10 = vld [vmem:[%s2976_s25 + $0x28] sm:$0xff]  ;;  %v283_v13 = vld [vmem:[%s2976_s25 + $0x30] sm:$0xff]  ;;  %v285_v17 = vld [vmem:[%s2976_s25 + $0x40] sm:$0xff]  ;;  %2524 = vmatprep.subr.bf16.mxu1 %v2700_v14  ;;  %v3097_v5 = vadd.s32 128, %v3094_v2  ;;  %v3100_v6 = vadd.s32 384, %v3094_v2  ;;  %p2792_p12 = scmp.ne.s32.totalorder %s3831_s16, %s2791_s21  ;;  %p2799_p2 = scmp.lt.s32.totalorder %s2797_s9, %s2791_s21 }
  0x1b   : > { %v286_v16 = vld [vmem:[%s2976_s25 + $0x48] sm:$0xff]  ;;  %2413 = vmatpush3.bf16.msra.mxu0 %v2701_v15  ;;  %v288_v22 = vld [vmem:[%s2976_s25 + $0x58] sm:$0xff]  ;;  %v287_v23 = vld [vmem:[%s2976_s25 + $0x50] sm:$0xff] }
  0x1c   : > { %2525 = vmatpush3.bf16.msra.mxu1 %v2702_v18  ;;  %2414 = vmatprep.subr.bf16.mxu0 %v2703_v19  ;;  %v2707_v25 = vld [vmem:[%s3883_s1 + $0x60] sm:$0xff]   ;;  %v290_v28 = vld [vmem:[%s2976_s25 + $0x68] sm:$0xff]  ;;  %v2711_v31 = vld [vmem:[%s3883_s1 + $0x58] sm:$0xff]   ;;  %p2793_p13 = pnand %p2792_p12, %p2944_p4  ;;  %p2800_p3 = por %p2799_p2, %p2798_p1 }
  0x1d   : > { %324 = vperm.xlu1 %2694, %v280_v8   ;;  %318 = vperm.xlu0 %2693, %v278_v9   ;;  %v2708_v26 = vld [vmem:[%s3883_s1 + $0xe0] sm:$0xff]   ;;  %v2712_v32 = vld [vmem:[%s3883_s1 + $0xd8] sm:$0xff]   ;;  %v291_v35 = vld [vmem:[%s2976_s25 + $0x70] sm:$0xff]  ;;  %v3103_v8 = vadd.s32 256, %v3094_v2 }
  0x1e   : > { %2526 = vmatprep.subr.bf16.mxu1 %v2704_v20  ;;  %v2709_v27 = vld [vmem:[%s3883_s1 + $0x20] sm:$0xff]   ;;  %v2713_v33 = vld [vmem:[%s3883_s1 + $0x18] sm:$0xff]   ;;  %v2715_v37 = vld [vmem:[%s3883_s1 + $0x50] sm:$0xff]   ;;  %p2794_p0 = pneg %p2793_p13 }
  0x1f   : > { %2415 = vmatpush3.bf16.msra.mxu0 %v2705_v21  ;;  %v289_v29 = vld [vmem:[%s2976_s25 + $0x60] sm:$0xff]  ;;  %v292_v34 = vld [vmem:[%s2976_s25 + $0x78] sm:$0xff]  ;;  %v2716_v38 = vld [vmem:[%s3883_s1 + $0xd0] sm:$0xff]  }
  0x20   : > { %2527 = vmatpush3.bf16.msra.mxu1 %v2706_v24  ;;  %2416 = vmatprep.subr.bf16.mxu0 %v2707_v25  ;;  %v2710_v30 = vld [vmem:[%s3883_s1 + $0xa0] sm:$0xff]   ;;  %v2714_v36 = vld [vmem:[%s3883_s1 + $0x98] sm:$0xff]   ;;  %v2717_v39 = vld [vmem:[%s3883_s1 + $0x10] sm:$0xff]   ;;  %p2801_p5 = pnand %p2800_p3, %p2794_p0 }
  0x21   : > { %330 = vperm.xlu1 %2694, %v282_v10   ;;  %327 = vperm.xlu0 %2693, %v281_v11   ;;  %v294_v40 = vld [vmem:[%s2976_s25 + $0x88] sm:$0xff]  ;;  %v293_v41 = vld [vmem:[%s2976_s25 + $0x80] sm:$0xff]  ;;  %v2718_v42 = vld [vmem:[%s3883_s1 + $0x90] sm:$0xff]   ;;  %v2870_v10 = vmov 1.0|1.0  }
  0x22   : > { %2528 = vmatprep.subr.bf16.mxu1 %v2708_v26  ;;  %v2719_v43 = vld [vmem:[%s3883_s1 + $0x48] sm:$0xff]   ;;  %v296_v46 = vld [vmem:[%s2976_s25 + $0x98] sm:$0xff]  ;;  %v295_v47 = vld [vmem:[%s2976_s25 + $0x90] sm:$0xff] }
  0x23   : > { %2417 = vmatpush3.bf16.msra.mxu0 %v2709_v27  ;;  %v2720_v44 = vld [vmem:[%s3883_s1 + $0xc8] sm:$0xff]   ;;  %v2723_v49 = vld [vmem:[%s3883_s1 + $0x40] sm:$0xff]   ;;  %v300_v55 = vld [vmem:[%s2976_s25 + $0xb8] sm:$0xff] }
  0x24   : > { %2529 = vmatpush3.bf16.msra.mxu1 %v2710_v30  ;;  %2418 = vmatprep.subr.bf16.mxu0 %v2711_v31  ;;  %v2721_v45 = vld [vmem:[%s3883_s1 + $0x8] sm:$0xff]   ;;  %v2724_v50 = vld [vmem:[%s3883_s1 + $0xc0] sm:$0xff]   ;;  %v299_v56 = vld [vmem:[%s2976_s25 + $0xb0] sm:$0xff] }
  0x25   : > { %336 = vperm.xlu1 %2694, %v284_v12   ;;  %333 = vperm.xlu0 %2693, %v283_v13   ;;  %v2722_v48 = vld [vmem:[%s3883_s1 + $0x88] sm:$0xff]   ;;  %v2725_v51 = vld [vmem:[%s3883_s1] sm:$0xff]   ;;  %v304_v59 = vld [vmem:[%s2976_s25 + $0xd8] sm:$0xff] }
  0x26   : > { %2530 = vmatprep.subr.bf16.mxu1 %v2712_v32  ;;  %v2726_v52 = vld [vmem:[%s3883_s1 + $0x80] sm:$0xff]   ;;  %v298_v53 = vld [vmem:[%s2976_s25 + $0xa8] sm:$0xff]  ;;  %v303_v60 = vld [vmem:[%s2976_s25 + $0xd0] sm:$0xff] }
  0x27   : > { %2419 = vmatpush3.bf16.msra.mxu0 %v2713_v33  ;;  %v297_v54 = vld [vmem:[%s2976_s25 + $0xa0] sm:$0xff]  ;;  %v302_v57 = vld [vmem:[%s2976_s25 + $0xc8] sm:$0xff]  ;;  %v308_v63 = vld [vmem:[%s2976_s25 + $0xf8] sm:$0xff] }
  0x28   : > { %2531 = vmatpush3.bf16.msra.mxu1 %v2714_v36  ;;  %2420 = vmatprep.subr.bf16.mxu0 %v2715_v37  ;;  %v301_v58 = vld [vmem:[%s2976_s25 + $0xc0] sm:$0xff]  ;;  %v306_v61 = vld [vmem:[%s2976_s25 + $0xe8] sm:$0xff]  ;;  %v307_v0 = vld [vmem:[%s2976_s25 + $0xf0] sm:$0xff] }
  0x29   : > { %342 = vperm.xlu1 %2694, %v286_v16   ;;  %339 = vperm.xlu0 %2693, %v285_v17   ;;  %v305_v62 = vld [vmem:[%s2976_s25 + $0xe0] sm:$0xff]  ;;  %s3829_s25 = scalar_lea.hbm %s3887_s5, %s2409_s15 }
  0x2a   : > { %2532 = vmatprep.subr.bf16.mxu1 %v2716_v38 }
  0x2b   : > { %2421 = vmatpush3.bf16.msra.mxu0 %v2717_v39 }
  0x2c   : > { %2533 = vmatpush3.bf16.msra.mxu1 %v2718_v42  ;;  %2422 = vmatprep.subr.bf16.mxu0 %v2719_v43 }
  0x2d   : > { %348 = vperm.xlu1 %2694, %v288_v22   ;;  %345 = vperm.xlu0 %2693, %v287_v23  }
  0x2e   : > { %2534 = vmatprep.subr.bf16.mxu1 %v2720_v44 }
  0x2f   : > { %2423 = vmatpush3.bf16.msra.mxu0 %v2721_v45 }
  0x30   : > { %2535 = vmatpush3.bf16.msra.mxu1 %v2722_v48  ;;  %2424 = vmatprep.subr.bf16.mxu0 %v2723_v49  ;;  %v923_v49 = vld [vmem:[%s3884_s2 + $0x8] sm:$0xff] }
  0x31   : > { %354 = vperm.xlu1 %2694, %v290_v28   ;;  %351 = vperm.xlu0 %2693, %v289_v29  }
  0x32   : > { %2536 = vmatprep.subr.bf16.mxu1 %v2724_v50 }
  0x33   : > { %2425 = vmatpush3.bf16.msra.mxu0 %v2725_v51 }
  0x34   : > { %2537 = vmatpush3.bf16.msra.mxu1 %v2726_v52 }
  0x35   : > { %360 = vperm.xlu1 %2694, %v292_v34   ;;  %357 = vperm.xlu0 %2693, %v291_v35  }
  0x39   : > { %366 = vperm.xlu1 %2694, %v294_v40   ;;  %363 = vperm.xlu0 %2693, %v293_v41   ;;  %v922_v41 = vld [vmem:[%s3884_s2] sm:$0xff] }
  0x3d   : > { %372 = vperm.xlu1 %2694, %v296_v46   ;;  %369 = vperm.xlu0 %2693, %v295_v47  }
  0x41   : > { %378 = vperm.xlu1 %2694, %v298_v53   ;;  %375 = vperm.xlu0 %2693, %v297_v54  }
  0x45   : > { %384 = vperm.xlu1 %2694, %v300_v55   ;;  %381 = vperm.xlu0 %2693, %v299_v56  }
  0x49   : > { %390 = vperm.xlu1 %2694, %v302_v57   ;;  %387 = vperm.xlu0 %2693, %v301_v58  }
  0x4d   : > { %396 = vperm.xlu1 %2694, %v304_v59   ;;  %393 = vperm.xlu0 %2693, %v303_v60   ;;  %v924_v59 = vld [vmem:[%s3884_s2 + $0x10] sm:$0xff] }
  0x51   : > { %402 = vperm.xlu1 %2694, %v306_v61   ;;  %399 = vperm.xlu0 %2693, %v305_v62  }
  0x55   : > { %408 = vperm.xlu1 %2694, %v308_v63   ;;  %405 = vperm.xlu0 %2693, %v307_v0  }
  0x94   : > { %v322_v3 = vpop.permute.xlu1 %321  ;;  %v316_v4 = vpop.permute.xlu0 %315 }
  0x95   : > { %vm411_vm0 = vcmp.eq.s32.totalorder %v3097_v5, %v316_v4  ;;  %vm413_vm5 = vcmp.eq.s32.totalorder %v3100_v6, %v316_v4  ;;  %vm410_vm8 = vcmp.eq.s32.totalorder %v3094_v2, %v316_v4  ;;  %vm419_vm9 = vcmp.eq.s32.totalorder %v3097_v5, %v322_v3 }
  0x96   : > { %vm412_vm12 = vcmp.eq.s32.totalorder %v3103_v8, %v316_v4  ;;  %vm421_vm13 = vcmp.eq.s32.totalorder %v3100_v6, %v322_v3 }
  0x98   : > { %v319_v7 = vpop.permute.xlu0 %318  ;;  %v325_v9 = vpop.permute.xlu1 %324 }
  0x99   : > { %vm415_vm1 = vcmp.eq.s32.totalorder %v3097_v5, %v319_v7  ;;  %vm417_vm2 = vcmp.eq.s32.totalorder %v3100_v6, %v319_v7  ;;  %vm414_vm3 = vcmp.eq.s32.totalorder %v3094_v2, %v319_v7  ;;  %vm416_vm6 = vcmp.eq.s32.totalorder %v3103_v8, %v319_v7 }
  0x9a   : > { %vm2273_vm4 = vmpackc.low %vm415_vm1, %vm411_vm0  ;;  %vm423_vm10 = vcmp.eq.s32.totalorder %v3097_v5, %v325_v9  ;;  %vm425_vm14 = vcmp.eq.s32.totalorder %v3100_v6, %v325_v9 }
  0x9b   : > { %2274 = vmatprep.mubr.msk.bf16.mxu0 %vm2273_vm4, %v2870_v10  ;;  %vm2337_vm7 = vmpackc.low %vm417_vm2, %vm413_vm5  ;;  %vm418_vm2 = vcmp.eq.s32.totalorder %v3094_v2, %v322_v3  ;;  %vm420_vm4 = vcmp.eq.s32.totalorder %v3103_v8, %v322_v3  ;;  %vm424_vm5 = vcmp.eq.s32.totalorder %v3103_v8, %v325_v9 }
  0x9c   : > { %2338 = vmatprep.mubr.msk.bf16.mxu1 %vm2337_vm7, %v2870_v10  ;;  %vm2275_vm11 = vmpackc.low %vm414_vm3, %vm410_vm8  ;;  %v331_v11 = vpop.permute.xlu1 %330  ;;  %v328_v12 = vpop.permute.xlu0 %327  ;;  %vm422_vm3 = vcmp.eq.s32.totalorder %v3094_v2, %v325_v9 }
  0x9d   : > { %2276 = vmatmul.mubr.msk.bf16.vlgmr.msra.gmra.mxu0 %vm2275_vm11, %v2870_v10  ;;  %vm2339_vm15 = vmpackc.low %vm416_vm6, %vm412_vm12  ;;  %vm427_vm6 = vcmp.eq.s32.totalorder %v3097_v5, %v328_v12  ;;  %vm431_vm7 = vcmp.eq.s32.totalorder %v3097_v5, %v331_v11 }
  0x9e   : > { %2340 = vmatmul.mubr.msk.bf16.vlgmr.msra.gmra.mxu1 %vm2339_vm15, %v2870_v10  ;;  %vm2277_vm0 = vmpackc.low %vm423_vm10, %vm419_vm9  ;;  %vm429_vm9 = vcmp.eq.s32.totalorder %v3100_v6, %v328_v12  ;;  %vm433_vm10 = vcmp.eq.s32.totalorder %v3100_v6, %v331_v11  ;;  %vm430_vm15 = vcmp.eq.s32.totalorder %v3094_v2, %v331_v11 }
  0x9f   : > { %2278 = vmatprep.mubr.msk.bf16.mxu0 %vm2277_vm0, %v2870_v10  ;;  %vm2341_vm1 = vmpackc.low %vm425_vm14, %vm421_vm13  ;;  %vm426_vm14 = vcmp.eq.s32.totalorder %v3094_v2, %v328_v12  ;;  %vm428_vm0 = vcmp.eq.s32.totalorder %v3103_v8, %v328_v12 }
  0xa0   : > { %2342 = vmatprep.mubr.msk.bf16.mxu1 %vm2341_vm1, %v2870_v10  ;;  %vm2279_vm8 = vmpackc.low %vm422_vm3, %vm418_vm2  ;;  %v337_v13 = vpop.permute.xlu1 %336  ;;  %v334_v14 = vpop.permute.xlu0 %333  ;;  %vm432_vm1 = vcmp.eq.s32.totalorder %v3103_v8, %v331_v11 }
  0xa1   : > { %vm2343_vm11 = vmpackc.low %vm424_vm5, %vm420_vm4  ;;  %vm435_vm2 = vcmp.eq.s32.totalorder %v3097_v5, %v334_v14  ;;  %vm439_vm3 = vcmp.eq.s32.totalorder %v3097_v5, %v337_v13  ;;  %vm437_vm5 = vcmp.eq.s32.totalorder %v3100_v6, %v334_v14 }
  0xa2   : > { %vm2281_vm12 = vmpackc.low %vm431_vm7, %vm427_vm6  ;;  %vm441_vm6 = vcmp.eq.s32.totalorder %v3100_v6, %v337_v13 }
  0xa3   : > { %vm2345_vm13 = vmpackc.low %vm433_vm10, %vm429_vm9  ;;  %vm434_vm10 = vcmp.eq.s32.totalorder %v3094_v2, %v334_v14 }
  0xa4   : > { %vm2283_vm4 = vmpackc.low %vm430_vm15, %vm426_vm14  ;;  %v343_v15 = vpop.permute.xlu1 %342  ;;  %v340_v16 = vpop.permute.xlu0 %339 }
  0xa5   : > { %2280 = vmatmul.mubr.msk.bf16.gmra.mxu0 %vm2279_vm8, %v2870_v10  ;;  %vm2347_vm7 = vmpackc.low %vm432_vm1, %vm428_vm0  ;;  %vm443_vm14 = vcmp.eq.s32.totalorder %v3097_v5, %v340_v16  ;;  %vm447_vm15 = vcmp.eq.s32.totalorder %v3097_v5, %v343_v15  ;;  %vm445_vm1 = vcmp.eq.s32.totalorder %v3100_v6, %v340_v16 }
  0xa6   : > { %2344 = vmatmul.mubr.msk.bf16.gmra.mxu1 %vm2343_vm11, %v2870_v10  ;;  %2282 = vmatprep.mubr.msk.bf16.mxu0 %vm2281_vm12, %v2870_v10  ;;  %vm2285_vm8 = vmpackc.low %vm439_vm3, %vm435_vm2  ;;  %vm438_vm11 = vcmp.eq.s32.totalorder %v3094_v2, %v337_v13  ;;  %vm436_vm12 = vcmp.eq.s32.totalorder %v3103_v8, %v334_v14  ;;  %vm449_vm2 = vcmp.eq.s32.totalorder %v3100_v6, %v343_v15  ;;  %v926_v14 = vld [vmem:[%s3884_s2 + $0x20] sm:$0xff] }
  0xa7   : > { %2346 = vmatprep.mubr.msk.bf16.mxu1 %vm2345_vm13, %v2870_v10  ;;  %vm2349_vm9 = vmpackc.low %vm441_vm6, %vm437_vm5  ;;  %vm440_vm13 = vcmp.eq.s32.totalorder %v3103_v8, %v337_v13  ;;  %vm442_vm6 = vcmp.eq.s32.totalorder %v3094_v2, %v340_v16 }
  0xa8   : > { %vm2287_vm0 = vmpackc.low %vm438_vm11, %vm434_vm10  ;;  %v349_v17 = vpop.permute.xlu1 %348  ;;  %v346_v18 = vpop.permute.xlu0 %345 }
  0xa9   : > { %vm2351_vm3 = vmpackc.low %vm440_vm13, %vm436_vm12  ;;  %vm451_vm10 = vcmp.eq.s32.totalorder %v3097_v5, %v346_v18  ;;  %vm455_vm11 = vcmp.eq.s32.totalorder %v3097_v5, %v349_v17  ;;  %vm453_vm13 = vcmp.eq.s32.totalorder %v3100_v6, %v346_v18 }
  0xaa   : > { %vm2353_vm5 = vmpackc.low %vm449_vm2, %vm445_vm1  ;;  %vm450_vm2 = vcmp.eq.s32.totalorder %v3094_v2, %v346_v18 }
  0xac   : > { %v355_v19 = vpop.permute.xlu1 %354  ;;  %v352_v20 = vpop.permute.xlu0 %351 }
  0xad   : > { %2284 = vmatmul.mubr.msk.bf16.gmra.mxu0 %vm2283_vm4, %v2870_v10  ;;  %vm2289_vm4 = vmpackc.low %vm447_vm15, %vm443_vm14  ;;  %vm457_vm14 = vcmp.eq.s32.totalorder %v3100_v6, %v349_v17 }
  0xae   : > { %2348 = vmatmul.mubr.msk.bf16.gmra.mxu1 %vm2347_vm7, %v2870_v10  ;;  %2286 = vmatprep.mubr.msk.bf16.mxu0 %vm2285_vm8, %v2870_v10  ;;  %vm446_vm7 = vcmp.eq.s32.totalorder %v3094_v2, %v343_v15  ;;  %vm444_vm8 = vcmp.eq.s32.totalorder %v3103_v8, %v340_v16  ;;  %vm2357_vm1 = vmpackc.low %vm457_vm14, %vm453_vm13  ;;  %vm458_vm14 = vcmp.eq.s32.totalorder %v3094_v2, %v352_v20 }
  0xaf   : > { %2350 = vmatprep.mubr.msk.bf16.mxu1 %vm2349_vm9, %v2870_v10  ;;  %vm448_vm9 = vcmp.eq.s32.totalorder %v3103_v8, %v343_v15  ;;  %vm2291_vm12 = vmpackc.low %vm446_vm7, %vm442_vm6  ;;  %vm459_vm6 = vcmp.eq.s32.totalorder %v3097_v5, %v352_v20  ;;  %vm463_vm7 = vcmp.eq.s32.totalorder %v3097_v5, %v355_v19 }
  0xb0   : > { %vm2355_vm15 = vmpackc.low %vm448_vm9, %vm444_vm8  ;;  %vm461_vm9 = vcmp.eq.s32.totalorder %v3100_v6, %v352_v20  ;;  %v361_v21 = vpop.permute.xlu1 %360  ;;  %v358_v22 = vpop.permute.xlu0 %357 }
  0xb4   : > { %v367_v23 = vpop.permute.xlu1 %366  ;;  %v364_v24 = vpop.permute.xlu0 %363 }
  0xb5   : > { %2288 = vmatmul.mubr.msk.bf16.gmra.mxu0 %vm2287_vm0, %v2870_v10  ;;  %vm2293_vm0 = vmpackc.low %vm455_vm11, %vm451_vm10  ;;  %vm465_vm10 = vcmp.eq.s32.totalorder %v3100_v6, %v355_v19 }
  0xb6   : > { %2352 = vmatmul.mubr.msk.bf16.gmra.mxu1 %vm2351_vm3, %v2870_v10  ;;  %2290 = vmatprep.mubr.msk.bf16.mxu0 %vm2289_vm4, %v2870_v10  ;;  %vm454_vm3 = vcmp.eq.s32.totalorder %v3094_v2, %v349_v17  ;;  %vm452_vm4 = vcmp.eq.s32.totalorder %v3103_v8, %v346_v18  ;;  %vm2361_vm13 = vmpackc.low %vm465_vm10, %vm461_vm9  ;;  %vm466_vm10 = vcmp.eq.s32.totalorder %v3094_v2, %v358_v22 }
  0xb7   : > { %2354 = vmatprep.mubr.msk.bf16.mxu1 %vm2353_vm5, %v2870_v10  ;;  %vm456_vm5 = vcmp.eq.s32.totalorder %v3103_v8, %v349_v17  ;;  %vm2295_vm8 = vmpackc.low %vm454_vm3, %vm450_vm2  ;;  %vm467_vm2 = vcmp.eq.s32.totalorder %v3097_v5, %v358_v22  ;;  %vm471_vm3 = vcmp.eq.s32.totalorder %v3097_v5, %v361_v21 }
  0xb8   : > { %vm2359_vm11 = vmpackc.low %vm456_vm5, %vm452_vm4  ;;  %vm469_vm5 = vcmp.eq.s32.totalorder %v3100_v6, %v358_v22  ;;  %v373_v25 = vpop.permute.xlu1 %372  ;;  %v370_v26 = vpop.permute.xlu0 %369 }
  0xbc   : > { %v379_v27 = vpop.permute.xlu1 %378  ;;  %v376_v28 = vpop.permute.xlu0 %375 }
  0xbd   : > { %2292 = vmatmul.mubr.msk.bf16.gmra.mxu0 %vm2291_vm12, %v2870_v10  ;;  %vm2297_vm12 = vmpackc.low %vm463_vm7, %vm459_vm6  ;;  %vm473_vm6 = vcmp.eq.s32.totalorder %v3100_v6, %v361_v21 }
  0xbe   : > { %2356 = vmatmul.mubr.msk.bf16.gmra.mxu1 %vm2355_vm15, %v2870_v10  ;;  %2294 = vmatprep.mubr.msk.bf16.mxu0 %vm2293_vm0, %v2870_v10  ;;  %vm462_vm15 = vcmp.eq.s32.totalorder %v3094_v2, %v355_v19  ;;  %vm460_vm0 = vcmp.eq.s32.totalorder %v3103_v8, %v352_v20  ;;  %vm2365_vm9 = vmpackc.low %vm473_vm6, %vm469_vm5  ;;  %vm474_vm6 = vcmp.eq.s32.totalorder %v3094_v2, %v364_v24 }
  0xbf   : > { %2358 = vmatprep.mubr.msk.bf16.mxu1 %vm2357_vm1, %v2870_v10  ;;  %vm464_vm1 = vcmp.eq.s32.totalorder %v3103_v8, %v355_v19  ;;  %vm2299_vm4 = vmpackc.low %vm462_vm15, %vm458_vm14  ;;  %vm475_vm14 = vcmp.eq.s32.totalorder %v3097_v5, %v364_v24  ;;  %vm479_vm15 = vcmp.eq.s32.totalorder %v3097_v5, %v367_v23 }
  0xc0   : > { %vm2363_vm7 = vmpackc.low %vm464_vm1, %vm460_vm0  ;;  %vm477_vm1 = vcmp.eq.s32.totalorder %v3100_v6, %v364_v24  ;;  %v385_v29 = vpop.permute.xlu1 %384  ;;  %v382_v30 = vpop.permute.xlu0 %381 }
  0xc4   : > { %v391_v31 = vpop.permute.xlu1 %390  ;;  %v388_v32 = vpop.permute.xlu0 %387 }
  0xc5   : > { %2296 = vmatmul.mubr.msk.bf16.gmra.mxu0 %vm2295_vm8, %v2870_v10  ;;  %vm2301_vm8 = vmpackc.low %vm471_vm3, %vm467_vm2  ;;  %vm481_vm2 = vcmp.eq.s32.totalorder %v3100_v6, %v367_v23 }
  0xc6   : > { %2360 = vmatmul.mubr.msk.bf16.gmra.mxu1 %vm2359_vm11, %v2870_v10  ;;  %2298 = vmatprep.mubr.msk.bf16.mxu0 %vm2297_vm12, %v2870_v10  ;;  %vm470_vm11 = vcmp.eq.s32.totalorder %v3094_v2, %v361_v21  ;;  %vm468_vm12 = vcmp.eq.s32.totalorder %v3103_v8, %v358_v22  ;;  %vm2369_vm5 = vmpackc.low %vm481_vm2, %vm477_vm1  ;;  %vm482_vm2 = vcmp.eq.s32.totalorder %v3094_v2, %v370_v26 }
  0xc7   : > { %2362 = vmatprep.mubr.msk.bf16.mxu1 %vm2361_vm13, %v2870_v10  ;;  %vm472_vm13 = vcmp.eq.s32.totalorder %v3103_v8, %v361_v21  ;;  %vm2303_vm0 = vmpackc.low %vm470_vm11, %vm466_vm10  ;;  %vm483_vm10 = vcmp.eq.s32.totalorder %v3097_v5, %v370_v26  ;;  %vm487_vm11 = vcmp.eq.s32.totalorder %v3097_v5, %v373_v25 }
  0xc8   : > { %vm2367_vm3 = vmpackc.low %vm472_vm13, %vm468_vm12  ;;  %vm485_vm13 = vcmp.eq.s32.totalorder %v3100_v6, %v370_v26  ;;  %v397_v33 = vpop.permute.xlu1 %396  ;;  %v394_v34 = vpop.permute.xlu0 %393 }
  0xcc   : > { %v403_v35 = vpop.permute.xlu1 %402  ;;  %v400_v36 = vpop.permute.xlu0 %399 }
  0xcd   : > { %2300 = vmatmul.mubr.msk.bf16.gmra.mxu0 %vm2299_vm4, %v2870_v10  ;;  %vm2305_vm4 = vmpackc.low %vm479_vm15, %vm475_vm14  ;;  %vm489_vm14 = vcmp.eq.s32.totalorder %v3100_v6, %v373_v25 }
  0xce   : > { %2364 = vmatmul.mubr.msk.bf16.gmra.mxu1 %vm2363_vm7, %v2870_v10  ;;  %2302 = vmatprep.mubr.msk.bf16.mxu0 %vm2301_vm8, %v2870_v10  ;;  %vm478_vm7 = vcmp.eq.s32.totalorder %v3094_v2, %v367_v23  ;;  %vm476_vm8 = vcmp.eq.s32.totalorder %v3103_v8, %v364_v24  ;;  %vm2373_vm1 = vmpackc.low %vm489_vm14, %vm485_vm13  ;;  %vm490_vm14 = vcmp.eq.s32.totalorder %v3094_v2, %v376_v28  ;;  %v927_v24 = vld [vmem:[%s3884_s2 + $0x28] sm:$0xff] }
  0xcf   : > { %2366 = vmatprep.mubr.msk.bf16.mxu1 %vm2365_vm9, %v2870_v10  ;;  %vm480_vm9 = vcmp.eq.s32.totalorder %v3103_v8, %v367_v23  ;;  %vm2307_vm12 = vmpackc.low %vm478_vm7, %vm474_vm6  ;;  %vm491_vm6 = vcmp.eq.s32.totalorder %v3097_v5, %v376_v28  ;;  %vm495_vm7 = vcmp.eq.s32.totalorder %v3097_v5, %v379_v27 }
  0xd0   : > { %vm2371_vm15 = vmpackc.low %vm480_vm9, %vm476_vm8  ;;  %vm493_vm9 = vcmp.eq.s32.totalorder %v3100_v6, %v376_v28  ;;  %v409_v37 = vpop.permute.xlu1 %408  ;;  %v406_v38 = vpop.permute.xlu0 %405 }
  0xd5   : > { %2304 = vmatmul.mubr.msk.bf16.gmra.mxu0 %vm2303_vm0, %v2870_v10  ;;  %vm2309_vm0 = vmpackc.low %vm487_vm11, %vm483_vm10  ;;  %vm497_vm10 = vcmp.eq.s32.totalorder %v3100_v6, %v379_v27 }
  0xd6   : > { %2368 = vmatmul.mubr.msk.bf16.gmra.mxu1 %vm2367_vm3, %v2870_v10  ;;  %2306 = vmatprep.mubr.msk.bf16.mxu0 %vm2305_vm4, %v2870_v10  ;;  %vm486_vm3 = vcmp.eq.s32.totalorder %v3094_v2, %v373_v25  ;;  %vm484_vm4 = vcmp.eq.s32.totalorder %v3103_v8, %v370_v26  ;;  %vm2377_vm13 = vmpackc.low %vm497_vm10, %vm493_vm9  ;;  %vm498_vm10 = vcmp.eq.s32.totalorder %v3094_v2, %v382_v30 }
  0xd7   : > { %2370 = vmatprep.mubr.msk.bf16.mxu1 %vm2369_vm5, %v2870_v10  ;;  %vm488_vm5 = vcmp.eq.s32.totalorder %v3103_v8, %v373_v25  ;;  %vm2311_vm8 = vmpackc.low %vm486_vm3, %vm482_vm2  ;;  %vm499_vm2 = vcmp.eq.s32.totalorder %v3097_v5, %v382_v30  ;;  %vm503_vm3 = vcmp.eq.s32.totalorder %v3097_v5, %v385_v29 }
  0xd8   : > { %vm2375_vm11 = vmpackc.low %vm488_vm5, %vm484_vm4  ;;  %vm501_vm5 = vcmp.eq.s32.totalorder %v3100_v6, %v382_v30 }
  0xdd   : > { %2308 = vmatmul.mubr.msk.bf16.gmra.mxu0 %vm2307_vm12, %v2870_v10  ;;  %vm2313_vm12 = vmpackc.low %vm495_vm7, %vm491_vm6  ;;  %vm505_vm6 = vcmp.eq.s32.totalorder %v3100_v6, %v385_v29 }
  0xde   : > { %2372 = vmatmul.mubr.msk.bf16.gmra.mxu1 %vm2371_vm15, %v2870_v10  ;;  %2310 = vmatprep.mubr.msk.bf16.mxu0 %vm2309_vm0, %v2870_v10  ;;  %vm494_vm15 = vcmp.eq.s32.totalorder %v3094_v2, %v379_v27  ;;  %vm492_vm0 = vcmp.eq.s32.totalorder %v3103_v8, %v376_v28  ;;  %vm2381_vm9 = vmpackc.low %vm505_vm6, %vm501_vm5  ;;  %vm506_vm6 = vcmp.eq.s32.totalorder %v3094_v2, %v388_v32 }
  0xdf   : > { %2374 = vmatprep.mubr.msk.bf16.mxu1 %vm2373_vm1, %v2870_v10  ;;  %vm496_vm1 = vcmp.eq.s32.totalorder %v3103_v8, %v379_v27  ;;  %vm2315_vm4 = vmpackc.low %vm494_vm15, %vm490_vm14  ;;  %vm507_vm14 = vcmp.eq.s32.totalorder %v3097_v5, %v388_v32  ;;  %vm511_vm15 = vcmp.eq.s32.totalorder %v3097_v5, %v391_v31 }
  0xe0   : > { %vm2379_vm7 = vmpackc.low %vm496_vm1, %vm492_vm0  ;;  %vm509_vm1 = vcmp.eq.s32.totalorder %v3100_v6, %v388_v32 }
  0xe5   : > { %2312 = vmatmul.mubr.msk.bf16.gmra.mxu0 %vm2311_vm8, %v2870_v10  ;;  %vm2317_vm8 = vmpackc.low %vm503_vm3, %vm499_vm2  ;;  %vm513_vm2 = vcmp.eq.s32.totalorder %v3100_v6, %v391_v31 }
  0xe6   : > { %2376 = vmatmul.mubr.msk.bf16.gmra.mxu1 %vm2375_vm11, %v2870_v10  ;;  %2314 = vmatprep.mubr.msk.bf16.mxu0 %vm2313_vm12, %v2870_v10  ;;  %vm502_vm11 = vcmp.eq.s32.totalorder %v3094_v2, %v385_v29  ;;  %vm500_vm12 = vcmp.eq.s32.totalorder %v3103_v8, %v382_v30  ;;  %vm2385_vm5 = vmpackc.low %vm513_vm2, %vm509_vm1  ;;  %vm514_vm2 = vcmp.eq.s32.totalorder %v3094_v2, %v394_v34 }
  0xe7   : > { %2378 = vmatprep.mubr.msk.bf16.mxu1 %vm2377_vm13, %v2870_v10  ;;  %vm504_vm13 = vcmp.eq.s32.totalorder %v3103_v8, %v385_v29  ;;  %vm2319_vm0 = vmpackc.low %vm502_vm11, %vm498_vm10  ;;  %vm515_vm10 = vcmp.eq.s32.totalorder %v3097_v5, %v394_v34  ;;  %vm519_vm11 = vcmp.eq.s32.totalorder %v3097_v5, %v397_v33 }
  0xe8   : > { %vm2383_vm3 = vmpackc.low %vm504_vm13, %vm500_vm12  ;;  %vm517_vm13 = vcmp.eq.s32.totalorder %v3100_v6, %v394_v34 }
  0xed   : > { %2316 = vmatmul.mubr.msk.bf16.gmra.mxu0 %vm2315_vm4, %v2870_v10  ;;  %vm2321_vm4 = vmpackc.low %vm511_vm15, %vm507_vm14  ;;  %vm521_vm14 = vcmp.eq.s32.totalorder %v3100_v6, %v397_v33 }
  0xee   : > { %2380 = vmatmul.mubr.msk.bf16.gmra.mxu1 %vm2379_vm7, %v2870_v10  ;;  %2318 = vmatprep.mubr.msk.bf16.mxu0 %vm2317_vm8, %v2870_v10  ;;  %vm510_vm7 = vcmp.eq.s32.totalorder %v3094_v2, %v391_v31  ;;  %vm508_vm8 = vcmp.eq.s32.totalorder %v3103_v8, %v388_v32  ;;  %vm2389_vm1 = vmpackc.low %vm521_vm14, %vm517_vm13  ;;  %vm522_vm14 = vcmp.eq.s32.totalorder %v3094_v2, %v400_v36 }
  0xef   : > { %2382 = vmatprep.mubr.msk.bf16.mxu1 %vm2381_vm9, %v2870_v10  ;;  %vm512_vm9 = vcmp.eq.s32.totalorder %v3103_v8, %v391_v31  ;;  %vm2323_vm12 = vmpackc.low %vm510_vm7, %vm506_vm6  ;;  %vm523_vm6 = vcmp.eq.s32.totalorder %v3097_v5, %v400_v36  ;;  %vm527_vm7 = vcmp.eq.s32.totalorder %v3097_v5, %v403_v35 }
  0xf0   : > { %vm2387_vm15 = vmpackc.low %vm512_vm9, %vm508_vm8  ;;  %vm525_vm9 = vcmp.eq.s32.totalorder %v3100_v6, %v400_v36 }
  0xf5   : > { %2320 = vmatmul.mubr.msk.bf16.gmra.mxu0 %vm2319_vm0, %v2870_v10  ;;  %vm2325_vm0 = vmpackc.low %vm519_vm11, %vm515_vm10  ;;  %vm529_vm10 = vcmp.eq.s32.totalorder %v3100_v6, %v403_v35 }
  0xf6   : > { %2384 = vmatmul.mubr.msk.bf16.gmra.mxu1 %vm2383_vm3, %v2870_v10  ;;  %2322 = vmatprep.mubr.msk.bf16.mxu0 %vm2321_vm4, %v2870_v10  ;;  %vm518_vm3 = vcmp.eq.s32.totalorder %v3094_v2, %v397_v33  ;;  %vm516_vm4 = vcmp.eq.s32.totalorder %v3103_v8, %v394_v34  ;;  %vm2393_vm13 = vmpackc.low %vm529_vm10, %vm525_vm9  ;;  %vm530_vm10 = vcmp.eq.s32.totalorder %v3094_v2, %v406_v38 }
  0xf7   : > { %2386 = vmatprep.mubr.msk.bf16.mxu1 %vm2385_vm5, %v2870_v10  ;;  %vm520_vm5 = vcmp.eq.s32.totalorder %v3103_v8, %v397_v33  ;;  %vm2327_vm8 = vmpackc.low %vm518_vm3, %vm514_vm2  ;;  %vm531_vm2 = vcmp.eq.s32.totalorder %v3097_v5, %v406_v38  ;;  %vm535_vm3 = vcmp.eq.s32.totalorder %v3097_v5, %v409_v37  ;;  %v925_v5 = vld [vmem:[%s3884_s2 + $0x18] sm:$0xff]  ;;  %v928_v33 = vld [vmem:[%s3884_s2 + $0x30] sm:$0xff] }
  0xf8   : > { %vm2391_vm11 = vmpackc.low %vm520_vm5, %vm516_vm4  ;;  %vm533_vm5 = vcmp.eq.s32.totalorder %v3100_v6, %v406_v38 }
  0xfd   : > { %2324 = vmatmul.mubr.msk.bf16.gmra.mxu0 %vm2323_vm12, %v2870_v10  ;;  %vm2329_vm12 = vmpackc.low %vm527_vm7, %vm523_vm6  ;;  %vm537_vm6 = vcmp.eq.s32.totalorder %v3100_v6, %v409_v37 }
  0xfe   : > { %2388 = vmatmul.mubr.msk.bf16.gmra.mxu1 %vm2387_vm15, %v2870_v10  ;;  %2326 = vmatprep.mubr.msk.bf16.mxu0 %vm2325_vm0, %v2870_v10  ;;  %vm526_vm15 = vcmp.eq.s32.totalorder %v3094_v2, %v403_v35  ;;  %vm524_vm0 = vcmp.eq.s32.totalorder %v3103_v8, %v400_v36  ;;  %vm2397_vm9 = vmpackc.low %vm537_vm6, %vm533_vm5 }
  0xff   : > { %2390 = vmatprep.mubr.msk.bf16.mxu1 %vm2389_vm1, %v2870_v10  ;;  %vm528_vm1 = vcmp.eq.s32.totalorder %v3103_v8, %v403_v35  ;;  %vm2331_vm4 = vmpackc.low %vm526_vm15, %vm522_vm14 }
 0x100   : > { %vm2395_vm7 = vmpackc.low %vm528_vm1, %vm524_vm0 }
 0x105   : > { %2328 = vmatmul.mubr.msk.bf16.gmra.mxu0 %vm2327_vm8, %v2870_v10  ;;  %vm2333_vm8 = vmpackc.low %vm535_vm3, %vm531_vm2 }
 0x106   : > { %2392 = vmatmul.mubr.msk.bf16.gmra.mxu1 %vm2391_vm11, %v2870_v10  ;;  %2330 = vmatprep.mubr.msk.bf16.mxu0 %vm2329_vm12, %v2870_v10  ;;  %vm534_vm11 = vcmp.eq.s32.totalorder %v3094_v2, %v409_v37  ;;  %vm532_vm12 = vcmp.eq.s32.totalorder %v3103_v8, %v406_v38 }
 0x107   : > { %2394 = vmatprep.mubr.msk.bf16.mxu1 %vm2393_vm13, %v2870_v10  ;;  %vm536_vm13 = vcmp.eq.s32.totalorder %v3103_v8, %v409_v37  ;;  %vm2335_vm14 = vmpackc.low %vm534_vm11, %vm530_vm10 }
 0x108   : > { %vm2399_vm15 = vmpackc.low %vm536_vm13, %vm532_vm12 }
 0x10d   : > { %2332 = vmatmul.mubr.msk.bf16.gmra.mxu0 %vm2331_vm4, %v2870_v10 }
 0x10e   : > { %2396 = vmatmul.mubr.msk.bf16.gmra.mxu1 %vm2395_vm7, %v2870_v10  ;;  %2334 = vmatprep.mubr.msk.bf16.mxu0 %vm2333_vm8, %v2870_v10 }
 0x10f   : > { %2398 = vmatprep.mubr.msk.bf16.mxu1 %vm2397_vm9, %v2870_v10 }
 0x115   : > { %2336 = vmatmul.mubr.msk.bf16.gmra.mxu0 %vm2335_vm14, %v2870_v10 }
 0x116   : > { %2400 = vmatmul.mubr.msk.bf16.gmra.mxu1 %vm2399_vm15, %v2870_v10 }
 0x15d   : > { %v2426_v39 = vpop.f32.mrf.mxu0 }
 0x15e   : > { %v2538_v40 = vpop.f32.mrf.mxu1 }
 0x15f   : > { %v2427_v42 = vpop.f32.mrf.mxu0 }
 0x160   : > { %v2428_v43 = vadd.f32 %v2427_v42, %v2426_v39  ;;  %v2539_v44 = vpop.f32.mrf.mxu1 }
 0x161   : > { %v2429_v45 = vpop.f32.mrf.mxu0  ;;  %v2540_v47 = vadd.f32 %v2539_v44, %v2538_v40  ;;  %v929_v44 = vld [vmem:[%s3884_s2 + $0x38] sm:$0xff] }
 0x162   : > { %v1181_v46 = vadd.f32 %v2428_v43, %v922_v41  ;;  %v2541_v48 = vpop.f32.mrf.mxu1 }
 0x163   : > { %v2430_v50 = vpop.f32.mrf.mxu0 }
 0x164   : > { %v3303_v51 = vadd.f32 %v2540_v47, %v1181_v46  ;;  %v2431_v52 = vadd.f32 %v2430_v50, %v2429_v45  ;;  %v2542_v53 = vpop.f32.mrf.mxu1 }
 0x165   : > { %v2432_v54 = vpop.f32.mrf.mxu0  ;;  %v2543_v56 = vadd.f32 %v2542_v53, %v2541_v48 }
 0x166   : > { %v1184_v55 = vadd.f32 %v2431_v52, %v923_v49  ;;  %v2544_v57 = vpop.f32.mrf.mxu1  ;;  %1468 = vadd.xlane.f32.xlu0 %v3303_v51  ;;  %v1564_v58 = vmul.f32 %v3303_v51, %v3303_v51 }
 0x167   : > { %v2433_v60 = vpop.f32.mrf.mxu0 }
 0x168   : > { %v3311_v61 = vadd.f32 %v2543_v56, %v1184_v55  ;;  %v2434_v62 = vadd.f32 %v2433_v60, %v2432_v54  ;;  %v2545_v63 = vpop.f32.mrf.mxu1  ;;  %1596 = vadd.xlane.f32.xlu1 %v1564_v58  ;;  %v930_v54 = vld [vmem:[%s3884_s2 + $0x40] sm:$0xff] }
 0x169   : > { %v2435_v0 = vpop.f32.mrf.mxu0  ;;  %v2546_v2 = vadd.f32 %v2545_v63, %v2544_v57 }
 0x16a   : > { %v1189_v1 = vadd.f32 %v2434_v62, %v924_v59  ;;  %v2547_v3 = vpop.f32.mrf.mxu1  ;;  %v1565_v4 = vmul.f32 %v3311_v61, %v3311_v61 }
 0x16b   : > { %v2436_v6 = vpop.f32.mrf.mxu0 }
 0x16c   : > { %v3318_v7 = vadd.f32 %v2546_v2, %v1189_v1  ;;  %v2437_v8 = vadd.f32 %v2436_v6, %v2435_v0  ;;  %v2548_v9 = vpop.f32.mrf.mxu1  ;;  %1598 = vadd.xlane.f32.xlu0 %v1565_v4  ;;  %1470 = vadd.xlane.f32.xlu1 %v3311_v61  ;;  %v931_v2 = vld [vmem:[%s3884_s2 + $0x48] sm:$0xff] }
 0x16d   : > { %v2438_v10 = vpop.f32.mrf.mxu0  ;;  %v2549_v16 = vadd.f32 %v2548_v9, %v2547_v3 }
 0x16e   : > { %v1192_v11 = vadd.f32 %v2437_v8, %v925_v5  ;;  %v2550_v12 = vpop.f32.mrf.mxu1  ;;  %v1566_v13 = vmul.f32 %v3318_v7, %v3318_v7 }
 0x16f   : > { %v2439_v15 = vpop.f32.mrf.mxu0 }
 0x170   : > { %v2440_v17 = vadd.f32 %v2439_v15, %v2438_v10  ;;  %v2551_v18 = vpop.f32.mrf.mxu1  ;;  %1472 = vadd.xlane.f32.xlu0 %v3318_v7  ;;  %1600 = vadd.xlane.f32.xlu1 %v1566_v13  ;;  %v3327_v20 = vadd.f32 %v2549_v16, %v1192_v11 }
 0x171   : > { %v2441_v19 = vpop.f32.mrf.mxu0  ;;  %v2552_v22 = vadd.f32 %v2551_v18, %v2550_v12  ;;  %v932_v12 = vld [vmem:[%s3884_s2 + $0x50] sm:$0xff] }
 0x172   : > { %v1197_v21 = vadd.f32 %v2440_v17, %v926_v14  ;;  %v2553_v23 = vpop.f32.mrf.mxu1  ;;  %v1567_v32 = vmul.f32 %v3327_v20, %v3327_v20 }
 0x173   : > { %v2442_v25 = vpop.f32.mrf.mxu0 }
 0x174   : > { %v3332_v26 = vadd.f32 %v2552_v22, %v1197_v21  ;;  %v2443_v27 = vadd.f32 %v2442_v25, %v2441_v19  ;;  %v2554_v28 = vpop.f32.mrf.mxu1  ;;  %1474 = vadd.xlane.f32.xlu0 %v3327_v20 }
 0x175   : > { %v2444_v29 = vpop.f32.mrf.mxu0  ;;  %v2555_v35 = vadd.f32 %v2554_v28, %v2553_v23 }
 0x176   : > { %v1200_v30 = vadd.f32 %v2443_v27, %v927_v24  ;;  %v2556_v31 = vpop.f32.mrf.mxu1  ;;  %1476 = vadd.xlane.f32.xlu1 %v3332_v26  ;;  %v1568_v38 = vmul.f32 %v3332_v26, %v3332_v26  ;;  %v933_v24 = vld [vmem:[%s3884_s2 + $0x58] sm:$0xff] }
 0x177   : > { %v2445_v34 = vpop.f32.mrf.mxu0 }
 0x178   : > { %v2446_v36 = vadd.f32 %v2445_v34, %v2444_v29  ;;  %v2557_v37 = vpop.f32.mrf.mxu1  ;;  %1602 = vadd.xlane.f32.xlu0 %v1567_v32  ;;  %v3343_v40 = vadd.f32 %v2555_v35, %v1200_v30  ;;  %v934_v34 = vld [vmem:[%s3884_s2 + $0x60] sm:$0xff] }
 0x179   : > { %v2447_v39 = vpop.f32.mrf.mxu0  ;;  %v2558_v42 = vadd.f32 %v2557_v37, %v2556_v31 }
 0x17a   : > { %v1205_v41 = vadd.f32 %v2446_v36, %v928_v33  ;;  %v2559_v43 = vpop.f32.mrf.mxu1  ;;  %1604 = vadd.xlane.f32.xlu1 %v1568_v38  ;;  %v1569_v53 = vmul.f32 %v3343_v40, %v3343_v40 }
 0x17b   : > { %v2448_v45 = vpop.f32.mrf.mxu0 }
 0x17c   : > { %v3348_v46 = vadd.f32 %v2558_v42, %v1205_v41  ;;  %v2449_v47 = vadd.f32 %v2448_v45, %v2447_v39  ;;  %v2560_v48 = vpop.f32.mrf.mxu1  ;;  %1478 = vadd.xlane.f32.xlu0 %v3343_v40 }
 0x17d   : > { %v2450_v49 = vpop.f32.mrf.mxu0  ;;  %v2561_v56 = vadd.f32 %v2560_v48, %v2559_v43 }
 0x17e   : > { %v1208_v50 = vadd.f32 %v2449_v47, %v929_v44  ;;  %v2562_v52 = vpop.f32.mrf.mxu1  ;;  %1480 = vadd.xlane.f32.xlu1 %v3348_v46  ;;  %v1570_v59 = vmul.f32 %v3348_v46, %v3348_v46  ;;  %v935_v47 = vld [vmem:[%s3884_s2 + $0x68] sm:$0xff] }
 0x17f   : > { %v2451_v55 = vpop.f32.mrf.mxu0 }
 0x180   : > { %v2452_v57 = vadd.f32 %v2451_v55, %v2450_v49  ;;  %v2563_v58 = vpop.f32.mrf.mxu1  ;;  %1606 = vadd.xlane.f32.xlu0 %v1569_v53  ;;  %v3359_v62 = vadd.f32 %v2561_v56, %v1208_v50 }
 0x181   : > { %v2453_v60 = vpop.f32.mrf.mxu0  ;;  %v2564_v0 = vadd.f32 %v2563_v58, %v2562_v52 }
 0x182   : > { %v1213_v63 = vadd.f32 %v2452_v57, %v930_v54  ;;  %v2565_v1 = vpop.f32.mrf.mxu1  ;;  %1608 = vadd.xlane.f32.xlu1 %v1570_v59  ;;  %v1571_v11 = vmul.f32 %v3359_v62, %v3359_v62  ;;  %v936_v57 = vld [vmem:[%s3884_s2 + $0x70] sm:$0xff] }
 0x183   : > { %v2454_v3 = vpop.f32.mrf.mxu0 }
 0x184   : > { %v3364_v4 = vadd.f32 %v2564_v0, %v1213_v63  ;;  %v2455_v5 = vadd.f32 %v2454_v3, %v2453_v60  ;;  %v2566_v6 = vpop.f32.mrf.mxu1  ;;  %1482 = vadd.xlane.f32.xlu0 %v3359_v62 }
 0x185   : > { %v2456_v8 = vpop.f32.mrf.mxu0  ;;  %v2567_v14 = vadd.f32 %v2566_v6, %v2565_v1 }
 0x186   : > { %v1216_v9 = vadd.f32 %v2455_v5, %v931_v2  ;;  %v2568_v10 = vpop.f32.mrf.mxu1  ;;  %1484 = vadd.xlane.f32.xlu1 %v3364_v4  ;;  %v1572_v17 = vmul.f32 %v3364_v4, %v3364_v4 }
 0x187   : > { %v2457_v13 = vpop.f32.mrf.mxu0 }
 0x188   : > { %v2458_v15 = vadd.f32 %v2457_v13, %v2456_v8  ;;  %v2569_v16 = vpop.f32.mrf.mxu1  ;;  %1610 = vadd.xlane.f32.xlu0 %v1571_v11  ;;  %v3375_v19 = vadd.f32 %v2567_v14, %v1216_v9  ;;  %v937_v8 = vld [vmem:[%s3884_s2 + $0x78] sm:$0xff] }
 0x189   : > { %v2459_v18 = vpop.f32.mrf.mxu0  ;;  %v2570_v22 = vadd.f32 %v2569_v16, %v2568_v10 }
 0x18a   : > { %v1221_v21 = vadd.f32 %v2458_v15, %v932_v12  ;;  %v2571_v23 = vpop.f32.mrf.mxu1  ;;  %1612 = vadd.xlane.f32.xlu1 %v1572_v17  ;;  %v1573_v33 = vmul.f32 %v3375_v19, %v3375_v19  ;;  %v938_v17 = vld [vmem:[%s3884_s2 + $0x80] sm:$0xff] }
 0x18b   : > { %v2460_v25 = vpop.f32.mrf.mxu0 }
 0x18c   : > { %v3380_v27 = vadd.f32 %v2570_v22, %v1221_v21  ;;  %v2461_v28 = vadd.f32 %v2460_v25, %v2459_v18  ;;  %v2572_v29 = vpop.f32.mrf.mxu1  ;;  %1486 = vadd.xlane.f32.xlu0 %v3375_v19 }
 0x18d   : > { %v2462_v30 = vpop.f32.mrf.mxu0  ;;  %v2573_v36 = vadd.f32 %v2572_v29, %v2571_v23 }
 0x18e   : > { %v1224_v31 = vadd.f32 %v2461_v28, %v933_v24  ;;  %v2574_v32 = vpop.f32.mrf.mxu1  ;;  %1488 = vadd.xlane.f32.xlu1 %v3380_v27  ;;  %v1574_v39 = vmul.f32 %v3380_v27, %v3380_v27 }
 0x18f   : > { %v2463_v35 = vpop.f32.mrf.mxu0 }
 0x190   : > { %v2464_v37 = vadd.f32 %v2463_v35, %v2462_v30  ;;  %v2575_v38 = vpop.f32.mrf.mxu1  ;;  %1614 = vadd.xlane.f32.xlu0 %v1573_v33  ;;  %v3391_v42 = vadd.f32 %v2573_v36, %v1224_v31 }
 0x191   : > { %v2465_v41 = vpop.f32.mrf.mxu0  ;;  %v2576_v44 = vadd.f32 %v2575_v38, %v2574_v32  ;;  %v939_v32 = vld [vmem:[%s3884_s2 + $0x88] sm:$0xff] }
 0x192   : > { %v1229_v43 = vadd.f32 %v2464_v37, %v934_v34  ;;  %v2577_v45 = vpop.f32.mrf.mxu1  ;;  %1616 = vadd.xlane.f32.xlu1 %v1574_v39  ;;  %v1575_v56 = vmul.f32 %v3391_v42, %v3391_v42 }
 0x193   : > { %v2466_v48 = vpop.f32.mrf.mxu0 }
 0x194   : > { %v3396_v49 = vadd.f32 %v2576_v44, %v1229_v43  ;;  %v2467_v50 = vadd.f32 %v2466_v48, %v2465_v41  ;;  %v2578_v52 = vpop.f32.mrf.mxu1  ;;  %1490 = vadd.xlane.f32.xlu0 %v3391_v42  ;;  %v940_v43 = vld [vmem:[%s3884_s2 + $0x90] sm:$0xff] }
 0x195   : > { %v2468_v53 = vpop.f32.mrf.mxu0  ;;  %v2579_v59 = vadd.f32 %v2578_v52, %v2577_v45 }
 0x196   : > { %v1232_v54 = vadd.f32 %v2467_v50, %v935_v47  ;;  %v2580_v55 = vpop.f32.mrf.mxu1  ;;  %1492 = vadd.xlane.f32.xlu1 %v3396_v49  ;;  %v1576_v0 = vmul.f32 %v3396_v49, %v3396_v49 }
 0x197   : > { %v2469_v58 = vpop.f32.mrf.mxu0 }
 0x198   : > { %v2470_v60 = vadd.f32 %v2469_v58, %v2468_v53  ;;  %v2581_v63 = vpop.f32.mrf.mxu1  ;;  %1618 = vadd.xlane.f32.xlu0 %v1575_v56  ;;  %v3407_v2 = vadd.f32 %v2579_v59, %v1232_v54 }
 0x199   : > { %v2471_v1 = vpop.f32.mrf.mxu0  ;;  %v2582_v5 = vadd.f32 %v2581_v63, %v2580_v55 }
 0x19a   : > { %v1237_v3 = vadd.f32 %v2470_v60, %v936_v57  ;;  %v2583_v6 = vpop.f32.mrf.mxu1  ;;  %1620 = vadd.xlane.f32.xlu1 %v1576_v0  ;;  %v1577_v16 = vmul.f32 %v3407_v2, %v3407_v2  ;;  %v941_v57 = vld [vmem:[%s3884_s2 + $0x98] sm:$0xff] }
 0x19b   : > { %v2472_v9 = vpop.f32.mrf.mxu0 }
 0x19c   : > { %v3412_v10 = vadd.f32 %v2582_v5, %v1237_v3  ;;  %v2473_v11 = vadd.f32 %v2472_v9, %v2471_v1  ;;  %v2584_v12 = vpop.f32.mrf.mxu1  ;;  %1494 = vadd.xlane.f32.xlu0 %v3407_v2 }
 0x19d   : > { %v2474_v13 = vpop.f32.mrf.mxu0  ;;  %v2585_v21 = vadd.f32 %v2584_v12, %v2583_v6  ;;  %v942_v6 = vld [vmem:[%s3884_s2 + $0xa0] sm:$0xff] }
 0x19e   : > { %v1240_v14 = vadd.f32 %v2473_v11, %v937_v8  ;;  %v2586_v15 = vpop.f32.mrf.mxu1  ;;  %1496 = vadd.xlane.f32.xlu1 %v3412_v10  ;;  %v1578_v24 = vmul.f32 %v3412_v10, %v3412_v10 }
 0x19f   : > { %v2475_v18 = vpop.f32.mrf.mxu0 }
 0x1a0   : > { %v2476_v22 = vadd.f32 %v2475_v18, %v2474_v13  ;;  %v2587_v23 = vpop.f32.mrf.mxu1  ;;  %1622 = vadd.xlane.f32.xlu0 %v1577_v16  ;;  %v3423_v28 = vadd.f32 %v2585_v21, %v1240_v14  ;;  %v943_v21 = vld [vmem:[%s3884_s2 + $0xa8] sm:$0xff] }
 0x1a1   : > { %v2477_v25 = vpop.f32.mrf.mxu0  ;;  %v2588_v30 = vadd.f32 %v2587_v23, %v2586_v15 }
 0x1a2   : > { %v1245_v29 = vadd.f32 %v2476_v22, %v938_v17  ;;  %v2589_v31 = vpop.f32.mrf.mxu1  ;;  %1624 = vadd.xlane.f32.xlu1 %v1578_v24  ;;  %v1579_v41 = vmul.f32 %v3423_v28, %v3423_v28 }
 0x1a3   : > { %v2478_v33 = vpop.f32.mrf.mxu0 }
 0x1a4   : > { %v3428_v34 = vadd.f32 %v2588_v30, %v1245_v29  ;;  %v2479_v35 = vadd.f32 %v2478_v33, %v2477_v25  ;;  %v2590_v36 = vpop.f32.mrf.mxu1  ;;  %1498 = vadd.xlane.f32.xlu0 %v3423_v28  ;;  %v944_v33 = vld [vmem:[%s3884_s2 + $0xb0] sm:$0xff] }
 0x1a5   : > { %v2480_v37 = vpop.f32.mrf.mxu0  ;;  %v2591_v45 = vadd.f32 %v2590_v36, %v2589_v31 }
 0x1a6   : > { %v1248_v38 = vadd.f32 %v2479_v35, %v939_v32  ;;  %v2592_v39 = vpop.f32.mrf.mxu1  ;;  %1500 = vadd.xlane.f32.xlu1 %v3428_v34  ;;  %v1580_v50 = vmul.f32 %v3428_v34, %v3428_v34 }
 0x1a7   : > { %v2481_v44 = vpop.f32.mrf.mxu0 }
 0x1a8   : > { %v2482_v47 = vadd.f32 %v2481_v44, %v2480_v37  ;;  %v2593_v48 = vpop.f32.mrf.mxu1  ;;  %1626 = vadd.xlane.f32.xlu0 %v1579_v41  ;;  %v3439_v53 = vadd.f32 %v2591_v45, %v1248_v38 }
 0x1a9   : > { %v2483_v52 = vpop.f32.mrf.mxu0  ;;  %v2594_v55 = vadd.f32 %v2593_v48, %v2592_v39  ;;  %v945_v48 = vld [vmem:[%s3884_s2 + $0xb8] sm:$0xff] }
 0x1aa   : > { %v1253_v54 = vadd.f32 %v2482_v47, %v940_v43  ;;  %v2595_v56 = vpop.f32.mrf.mxu1  ;;  %1628 = vadd.xlane.f32.xlu1 %v1580_v50  ;;  %v1581_v5 = vmul.f32 %v3439_v53, %v3439_v53 }
 0x1ab   : > { %v2484_v58 = vpop.f32.mrf.mxu0 }
 0x1ac   : > { %v3444_v59 = vadd.f32 %v2594_v55, %v1253_v54  ;;  %v2485_v60 = vadd.f32 %v2484_v58, %v2483_v52  ;;  %v2596_v63 = vpop.f32.mrf.mxu1  ;;  %1502 = vadd.xlane.f32.xlu0 %v3439_v53 }
 0x1ad   : > { %v2486_v0 = vpop.f32.mrf.mxu0  ;;  %v2597_v9 = vadd.f32 %v2596_v63, %v2595_v56  ;;  %v946_v63 = vld [vmem:[%s3884_s2 + $0xc0] sm:$0xff] }
 0x1ae   : > { %v1256_v1 = vadd.f32 %v2485_v60, %v941_v57  ;;  %v2598_v3 = vpop.f32.mrf.mxu1  ;;  %1504 = vadd.xlane.f32.xlu1 %v3444_v59  ;;  %v1582_v13 = vmul.f32 %v3444_v59, %v3444_v59 }
 0x1af   : > { %v2487_v8 = vpop.f32.mrf.mxu0 }
 0x1b0   : > { %v2488_v11 = vadd.f32 %v2487_v8, %v2486_v0  ;;  %v2599_v12 = vpop.f32.mrf.mxu1  ;;  %1630 = vadd.xlane.f32.xlu0 %v1581_v5  ;;  %v3455_v15 = vadd.f32 %v2597_v9, %v1256_v1 }
 0x1b1   : > { %v2489_v14 = vpop.f32.mrf.mxu0  ;;  %v2600_v17 = vadd.f32 %v2599_v12, %v2598_v3 }
 0x1b2   : > { %v1261_v16 = vadd.f32 %v2488_v11, %v942_v6  ;;  %v2601_v18 = vpop.f32.mrf.mxu1  ;;  %1632 = vadd.xlane.f32.xlu1 %v1582_v13  ;;  %v1583_v32 = vmul.f32 %v3455_v15, %v3455_v15 }
 0x1b3   : > { %v2490_v22 = vpop.f32.mrf.mxu0 }
 0x1b4   : > { %v3460_v23 = vadd.f32 %v2600_v17, %v1261_v16  ;;  %v2491_v24 = vadd.f32 %v2490_v22, %v2489_v14  ;;  %v2602_v25 = vpop.f32.mrf.mxu1  ;;  %1506 = vadd.xlane.f32.xlu0 %v3455_v15  ;;  %v947_v14 = vld [vmem:[%s3884_s2 + $0xc8] sm:$0xff] }
 0x1b5   : > { %v2492_v29 = vpop.f32.mrf.mxu0  ;;  %v2603_v36 = vadd.f32 %v2602_v25, %v2601_v18 }
 0x1b6   : > { %v1264_v30 = vadd.f32 %v2491_v24, %v943_v21  ;;  %v2604_v31 = vpop.f32.mrf.mxu1  ;;  %1508 = vadd.xlane.f32.xlu1 %v3460_v23  ;;  %v1584_v39 = vmul.f32 %v3460_v23, %v3460_v23 }
 0x1b7   : > { %v2493_v35 = vpop.f32.mrf.mxu0 }
 0x1b8   : > { %v2494_v37 = vadd.f32 %v2493_v35, %v2492_v29  ;;  %v2605_v38 = vpop.f32.mrf.mxu1  ;;  %1634 = vadd.xlane.f32.xlu0 %v1583_v32  ;;  %v3471_v43 = vadd.f32 %v2603_v36, %v1264_v30  ;;  %v948_v30 = vld [vmem:[%s3884_s2 + $0xd0] sm:$0xff] }
 0x1b9   : > { %v2495_v41 = vpop.f32.mrf.mxu0  ;;  %v2606_v45 = vadd.f32 %v2605_v38, %v2604_v31 }
 0x1ba   : > { %v1269_v44 = vadd.f32 %v2494_v37, %v944_v33  ;;  %v2607_v47 = vpop.f32.mrf.mxu1  ;;  %1636 = vadd.xlane.f32.xlu1 %v1584_v39  ;;  %v1585_v60 = vmul.f32 %v3471_v43, %v3471_v43 }
 0x1bb   : > { %v2496_v50 = vpop.f32.mrf.mxu0 }
 0x1bc   : > { %v3476_v52 = vadd.f32 %v2606_v45, %v1269_v44  ;;  %v2497_v54 = vadd.f32 %v2496_v50, %v2495_v41  ;;  %v2608_v55 = vpop.f32.mrf.mxu1  ;;  %1510 = vadd.xlane.f32.xlu0 %v3471_v43  ;;  %v949_v45 = vld [vmem:[%s3884_s2 + $0xd8] sm:$0xff] }
 0x1bd   : > { %v2498_v56 = vpop.f32.mrf.mxu0  ;;  %v2609_v1 = vadd.f32 %v2608_v55, %v2607_v47 }
 0x1be   : > { %v1272_v57 = vadd.f32 %v2497_v54, %v945_v48  ;;  %v2610_v58 = vpop.f32.mrf.mxu1  ;;  %1512 = vadd.xlane.f32.xlu1 %v3476_v52  ;;  %v1586_v6 = vmul.f32 %v3476_v52, %v3476_v52 }
 0x1bf   : > { %v2499_v0 = vpop.f32.mrf.mxu0 }
 0x1c0   : > { %v2500_v3 = vadd.f32 %v2499_v0, %v2498_v56  ;;  %v2611_v5 = vpop.f32.mrf.mxu1  ;;  %1638 = vadd.xlane.f32.xlu0 %v1585_v60  ;;  %v3487_v9 = vadd.f32 %v2609_v1, %v1272_v57  ;;  %v950_v60 = vld [vmem:[%s3884_s2 + $0xe0] sm:$0xff] }
 0x1c1   : > { %v2501_v8 = vpop.f32.mrf.mxu0  ;;  %v2612_v12 = vadd.f32 %v2611_v5, %v2610_v58 }
 0x1c2   : > { %v1277_v11 = vadd.f32 %v2500_v3, %v946_v63  ;;  %v2613_v13 = vpop.f32.mrf.mxu1  ;;  %1640 = vadd.xlane.f32.xlu1 %v1586_v6  ;;  %v1587_v29 = vmul.f32 %v3487_v9, %v3487_v9 }
 0x1c3   : > { %v2502_v16 = vpop.f32.mrf.mxu0 }
 0x1c4   : > { %v3492_v17 = vadd.f32 %v2612_v12, %v1277_v11  ;;  %v2503_v18 = vadd.f32 %v2502_v16, %v2501_v8  ;;  %v2614_v21 = vpop.f32.mrf.mxu1  ;;  %1514 = vadd.xlane.f32.xlu0 %v3487_v9 }
 0x1c5   : > { %v2504_v22 = vpop.f32.mrf.mxu0  ;;  %v2615_v32 = vadd.f32 %v2614_v21, %v2613_v13 }
 0x1c6   : > { %v1280_v24 = vadd.f32 %v2503_v18, %v947_v14  ;;  %v2616_v25 = vpop.f32.mrf.mxu1  ;;  %1516 = vadd.xlane.f32.xlu1 %v3492_v17  ;;  %v1588_v36 = vmul.f32 %v3492_v17, %v3492_v17  ;;  %v951_v14 = vld [vmem:[%s3884_s2 + $0xe8] sm:$0xff] }
 0x1c7   : > { %v2505_v31 = vpop.f32.mrf.mxu0 }
 0x1c8   : > { %v2506_v33 = vadd.f32 %v2505_v31, %v2504_v22  ;;  %v2617_v35 = vpop.f32.mrf.mxu1  ;;  %1642 = vadd.xlane.f32.xlu0 %v1587_v29  ;;  %v3503_v38 = vadd.f32 %v2615_v32, %v1280_v24  ;;  %v952_v31 = vld [vmem:[%s3884_s2 + $0xf0] sm:$0xff] }
 0x1c9   : > { %v2507_v37 = vpop.f32.mrf.mxu0  ;;  %v2618_v41 = vadd.f32 %v2617_v35, %v2616_v25 }
 0x1ca   : > { %v1285_v39 = vadd.f32 %v2506_v33, %v948_v30  ;;  %v2619_v44 = vpop.f32.mrf.mxu1  ;;  %1644 = vadd.xlane.f32.xlu1 %v1588_v36  ;;  %v1589_v58 = vmul.f32 %v3503_v38, %v3503_v38 }
 0x1cb   : > { %v2508_v47 = vpop.f32.mrf.mxu0 }
 0x1cc   : > { %v3508_v48 = vadd.f32 %v2618_v41, %v1285_v39  ;;  %v2509_v50 = vadd.f32 %v2508_v47, %v2507_v37  ;;  %v2620_v54 = vpop.f32.mrf.mxu1  ;;  %1518 = vadd.xlane.f32.xlu0 %v3503_v38 }
 0x1cd   : > { %v2510_v55 = vpop.f32.mrf.mxu0  ;;  %v2621_v0 = vadd.f32 %v2620_v54, %v2619_v44 }
 0x1ce   : > { %v1288_v56 = vadd.f32 %v2509_v50, %v949_v45  ;;  %v2622_v57 = vpop.f32.mrf.mxu1  ;;  %1520 = vadd.xlane.f32.xlu1 %v3508_v48  ;;  %v1590_v5 = vmul.f32 %v3508_v48, %v3508_v48  ;;  %v953_v50 = vld [vmem:[%s3884_s2 + $0xf8] sm:$0xff] }
 0x1cf   : > { %v2511_v63 = vpop.f32.mrf.mxu0 }
 0x1d0   : > { %v2512_v1 = vadd.f32 %v2511_v63, %v2510_v55  ;;  %v2623_v3 = vpop.f32.mrf.mxu1  ;;  %1646 = vadd.xlane.f32.xlu0 %v1589_v58  ;;  %v3519_v8 = vadd.f32 %v2621_v0, %v1288_v56 }
 0x1d1   : > { %v2513_v6 = vpop.f32.mrf.mxu0  ;;  %v2624_v12 = vadd.f32 %v2623_v3, %v2622_v57 }
 0x1d2   : > { %v1293_v11 = vadd.f32 %v2512_v1, %v950_v60  ;;  %v2625_v13 = vpop.f32.mrf.mxu1  ;;  %1648 = vadd.xlane.f32.xlu1 %v1590_v5  ;;  %v1591_v30 = vmul.f32 %v3519_v8, %v3519_v8 }
 0x1d3   : > { %v2514_v16 = vpop.f32.mrf.mxu0 }
 0x1d4   : > { %v3524_v18 = vadd.f32 %v2624_v12, %v1293_v11  ;;  %v2515_v21 = vadd.f32 %v2514_v16, %v2513_v6  ;;  %v2626_v22 = vpop.f32.mrf.mxu1  ;;  %1522 = vadd.xlane.f32.xlu0 %v3519_v8 }
 0x1d5   : > { %v2516_v24 = vpop.f32.mrf.mxu0  ;;  %v2627_v33 = vadd.f32 %v2626_v22, %v2625_v13 }
 0x1d6   : > { %v1296_v25 = vadd.f32 %v2515_v21, %v951_v14  ;;  %v2628_v29 = vpop.f32.mrf.mxu1  ;;  %1524 = vadd.xlane.f32.xlu1 %v3524_v18  ;;  %v1592_v37 = vmul.f32 %v3524_v18, %v3524_v18 }
 0x1d7   : > { %v2517_v32 = vpop.f32.mrf.mxu0 }
 0x1d8   : > { %v2518_v35 = vadd.f32 %v2517_v32, %v2516_v24  ;;  %v2629_v36 = vpop.f32.mrf.mxu1  ;;  %1650 = vadd.xlane.f32.xlu0 %v1591_v30  ;;  %v3535_v41 = vadd.f32 %v2627_v33, %v1296_v25 }
 0x1d9   : > { %v2519_v39 = vpop.f32.mrf.mxu0  ;;  %v2630_v45 = vadd.f32 %v2629_v36, %v2628_v29 }
 0x1da   : > { %v1301_v44 = vadd.f32 %v2518_v35, %v952_v31  ;;  %v2631_v47 = vpop.f32.mrf.mxu1  ;;  %1652 = vadd.xlane.f32.xlu1 %v1592_v37  ;;  %v1593_v60 = vmul.f32 %v3535_v41, %v3535_v41 }
 0x1db   : > { %v2520_v54 = vpop.f32.mrf.mxu0 }
 0x1dc   : > { %v3540_v55 = vadd.f32 %v2630_v45, %v1301_v44  ;;  %v2521_v56 = vadd.f32 %v2520_v54, %v2519_v39  ;;  %1526 = vadd.xlane.f32.xlu0 %v3535_v41  ;;  %v2632_v57 = vpop.f32.mrf.mxu1 }
 0x1dd   : > { %v2633_v63 = vadd.f32 %v2632_v57, %v2631_v47 }
 0x1de   : > { %v1304_v58 = vadd.f32 %v2521_v56, %v953_v50  ;;  %1528 = vadd.xlane.f32.xlu1 %v3540_v55  ;;  %v1594_v0 = vmul.f32 %v3540_v55, %v3540_v55 }
 0x1e0   : > { %1654 = vadd.xlane.f32.xlu0 %v1593_v60  ;;  %v3548_v1 = vadd.f32 %v2633_v63, %v1304_v58 }
 0x1e2   : > { %1656 = vadd.xlane.f32.xlu1 %v1594_v0  ;;  %v1595_v3 = vmul.f32 %v3548_v1, %v3548_v1 }
 0x1e4   : > { %1530 = vadd.xlane.f32.xlu0 %v3548_v1 }
 0x1e8   : > { %1658 = vadd.xlane.f32.xlu0 %v1595_v3 }
 0x1ef   : > { %v1469_v5 = vpop.xlane.xlu0 %1468 }
 0x1f0   : > { %v1532_v6 = vmul.f32 0.0078125, %v1469_v5 }
 0x1f1   : > { %v1597_v11 = vpop.xlane.xlu1 %1596 }
 0x1f2   : > { %v1692_v12 = vmul.f32 %v1532_v6, %v1532_v6  ;;  %v1660_v13 = vmul.f32 0.0078125, %v1597_v11  ;;  %v1756_v63 = vsub.f32 %v3303_v51, %v1532_v6  ;;  %v3575_v51 = vld [vmem:[%s3886_s4] ss:$0 sm:$0xff] }
 0x1f4   : > { %v1724_v14 = vsub.f32 %v1660_v13, %v1692_v12  ;;  %v3566_v12 = vld [vmem:[%s3885_s3] ss:$0 sm:$0xff] }
 0x1f5   : > { %v1471_v16 = vpop.xlane.xlu1 %1470  ;;  %v1599_v21 = vpop.xlane.xlu0 %1598 }
 0x1f6   : > { %v1788_v22 = vadd.f32 1e-12, %v1724_v14  ;;  %v1533_v24 = vmul.f32 0.0078125, %v1471_v16  ;;  %v1661_v29 = vmul.f32 0.0078125, %v1599_v21 }
 0x1f8   : > { %2727 = vrsqrt.f32 %v1788_v22  ;;  %v1693_v25 = vmul.f32 %v1533_v24, %v1533_v24 }
 0x1f9   : > { %v1601_v30 = vpop.xlane.xlu1 %1600  ;;  %v1473_v31 = vpop.xlane.xlu0 %1472 }
 0x1fa   : > { %v1725_v32 = vsub.f32 %v1661_v29, %v1693_v25  ;;  %v1534_v33 = vmul.f32 0.0078125, %v1473_v31  ;;  %v1662_v36 = vmul.f32 0.0078125, %v1601_v30  ;;  %v1757_v30 = vsub.f32 %v3311_v61, %v1533_v24 }
 0x1fc   : > { %v1789_v35 = vadd.f32 1e-12, %v1725_v32  ;;  %v1694_v37 = vmul.f32 %v1534_v33, %v1534_v33 }
 0x1fd   : > { %v1475_v39 = vpop.xlane.xlu0 %1474 }
 0x1fe   : > { %2729 = vrsqrt.f32 %v1789_v35  ;;  %v1726_v44 = vsub.f32 %v1662_v36, %v1694_v37  ;;  %v3553_v45 = vmul.f32 0.0078125, %v1475_v39 }
 0x1ff   : > { %v1477_v47 = vpop.xlane.xlu1 %1476 }
 0x200   : > { %v1790_v50 = vadd.f32 1e-12, %v1726_v44  ;;  %v3555_v54 = vmul.f32 0.0078125, %v1477_v47  ;;  %v1695_v57 = vmul.f32 %v3553_v45, %v3553_v45 }
 0x201   : > { %v1603_v56 = vpop.xlane.xlu0 %1602 }
 0x202   : > { %2731 = vrsqrt.f32 %v1790_v50  ;;  %v1663_v58 = vmul.f32 0.0078125, %v1603_v56  ;;  %v1696_v0 = vmul.f32 %v3555_v54, %v3555_v54  ;;  %v1758_v56 = vsub.f32 %v3318_v7, %v1534_v33 }
 0x203   : > { %v1605_v60 = vpop.xlane.xlu1 %1604 }
 0x204   : > { %v1727_v3 = vsub.f32 %v1663_v58, %v1695_v57  ;;  %v1664_v5 = vmul.f32 0.0078125, %v1605_v60 }
 0x205   : > { %v2728_v11 = vpop.eup %2727  ;;  %v1479_v13 = vpop.xlane.xlu0 %1478 }
 0x206   : > { %v1852_v14 = vmul.f32 %v2728_v11, %v1756_v63  ;;  %v1791_v16 = vadd.f32 1e-12, %v1727_v3  ;;  %v1728_v21 = vsub.f32 %v1664_v5, %v1696_v0  ;;  %v3570_v22 = vmul.f32 0.0078125, %v1479_v13 }
 0x207   : > { %v1481_v6 = vpop.xlane.xlu1 %1480 }
 0x208   : > { %v1891_v25 = vmul.f32 %v3566_v12, %v1852_v14  ;;  %2733 = vrsqrt.f32 %v1791_v16  ;;  %v1792_v29 = vadd.f32 1e-12, %v1728_v21  ;;  %v3579_v31 = vmul.f32 0.0078125, %v1481_v6 }
 0x209   : > { %v1607_v32 = vpop.xlane.xlu0 %1606  ;;  %v1697_v36 = vmul.f32 %v3570_v22, %v3570_v22 }
 0x20a   : > { %v1930_v35 = vadd.f32 %v3575_v51, %v1891_v25  ;;  %2735 = vrsqrt.f32 %v1792_v29  ;;  %v1665_v37 = vmul.f32 0.0078125, %v1607_v32  ;;  %v1698_v61 = vmul.f32 %v3579_v31, %v3579_v31 }
 0x20b   : > { %v2730_v39 = vpop.eup %2729  ;;  %v1609_v44 = vpop.xlane.xlu1 %1608  ;;  %v1759_v25 = vsub.f32 %v3327_v20, %v3553_v45 }
 0x20c   : > { %1962 = vst [vmem:[%s3584_s14] sm:$0xff] %v1930_v35  ;;  %v1853_v47 = vmul.f32 %v2730_v39, %v1757_v30  ;;  %v1729_v24 = vsub.f32 %v1665_v37, %v1697_v36  ;;  %v1666_v50 = vmul.f32 0.0078125, %v1609_v44  ;;  %v1760_v39 = vsub.f32 %v3332_v26, %v3555_v54 }
 0x20d   : > { %v1483_v57 = vpop.xlane.xlu0 %1482 }
 0x20e   : > { %v1892_v58 = vmul.f32 %v3566_v12, %v1853_v47  ;;  %v1793_v60 = vadd.f32 1e-12, %v1729_v24  ;;  %v1730_v63 = vsub.f32 %v1666_v50, %v1698_v61  ;;  %v3591_v0 = vmul.f32 0.0078125, %v1483_v57 }
 0x20f   : > { %v2732_v3 = vpop.eup %2731  ;;  %v1485_v5 = vpop.xlane.xlu1 %1484 }
 0x210   : > { %v1931_v11 = vadd.f32 %v3575_v51, %v1892_v58  ;;  %v1854_v13 = vmul.f32 %v2732_v3, %v1758_v56  ;;  %2737 = vrsqrt.f32 %v1793_v60  ;;  %v1794_v14 = vadd.f32 1e-12, %v1730_v63 }
 0x211   : > { %v3594_v16 = vmul.f32 0.0078125, %v1485_v5  ;;  %v1611_v21 = vpop.xlane.xlu0 %1610  ;;  %v1699_v33 = vmul.f32 %v3591_v0, %v3591_v0 }
 0x212   : > { %1963 = vst [vmem:[%s3584_s14 + $0x8] sm:$0xff] %v1931_v11  ;;  %v1893_v7 = vmul.f32 %v3566_v12, %v1854_v13  ;;  %2739 = vrsqrt.f32 %v1794_v14  ;;  %v1667_v6 = vmul.f32 0.0078125, %v1611_v21  ;;  %v1761_v11 = vsub.f32 %v3343_v40, %v3570_v22 }
 0x213   : > { %v1613_v29 = vpop.xlane.xlu1 %1612  ;;  %v1700_v32 = vmul.f32 %v3594_v16, %v3594_v16 }
 0x214   : > { %v1932_v30 = vadd.f32 %v3575_v51, %v1893_v7  ;;  %v1731_v35 = vsub.f32 %v1667_v6, %v1699_v33  ;;  %v1668_v36 = vmul.f32 0.0078125, %v1613_v29 }
 0x215   : > { %v2734_v37 = vpop.eup %2733  ;;  %v1487_v44 = vpop.xlane.xlu0 %1486 }
 0x216   : > { %1964 = vst [vmem:[%s3584_s14 + $0x10] sm:$0xff] %v1932_v30  ;;  %v1855_v47 = vmul.f32 %v2734_v37, %v1759_v25  ;;  %v1795_v61 = vadd.f32 1e-12, %v1731_v35  ;;  %v1732_v24 = vsub.f32 %v1668_v36, %v1700_v32  ;;  %v3608_v50 = vmul.f32 0.0078125, %v1487_v44 }
 0x217   : > { %v2736_v20 = vpop.eup %2735  ;;  %v1489_v45 = vpop.xlane.xlu1 %1488  ;;  %v1762_v25 = vsub.f32 %v3348_v46, %v3579_v31 }
 0x218   : > { %v1894_v56 = vmul.f32 %v3566_v12, %v1855_v47  ;;  %v1856_v57 = vmul.f32 %v2736_v20, %v1760_v39  ;;  %2741 = vrsqrt.f32 %v1795_v61  ;;  %v1796_v58 = vadd.f32 1e-12, %v1732_v24 }
 0x219   : > { %v1701_v60 = vmul.f32 %v3608_v50, %v3608_v50  ;;  %v3613_v63 = vmul.f32 0.0078125, %v1489_v45  ;;  %v1615_v26 = vpop.xlane.xlu0 %1614  ;;  %v1763_v45 = vsub.f32 %v3359_v62, %v3591_v0 }
 0x21a   : > { %v1933_v54 = vadd.f32 %v3575_v51, %v1894_v56  ;;  %v1895_v3 = vmul.f32 %v3566_v12, %v1856_v57  ;;  %2743 = vrsqrt.f32 %v1796_v58  ;;  %v1669_v5 = vmul.f32 0.0078125, %v1615_v26 }
 0x21b   : > { %v1617_v13 = vpop.xlane.xlu1 %1616  ;;  %v1702_v21 = vmul.f32 %v3613_v63, %v3613_v63 }
 0x21c   : > { %1965 = vst [vmem:[%s3584_s14 + $0x18] sm:$0xff] %v1933_v54  ;;  %v1934_v14 = vadd.f32 %v3575_v51, %v1895_v3  ;;  %v1733_v7 = vsub.f32 %v1669_v5, %v1701_v60  ;;  %v1670_v33 = vmul.f32 0.0078125, %v1617_v13  ;;  %v1764_v3 = vsub.f32 %v3364_v4, %v3594_v16 }
 0x21d   : > { %v2738_v6 = vpop.eup %2737  ;;  %v1491_v29 = vpop.xlane.xlu0 %1490 }
 0x21e   : > { %1966 = vst [vmem:[%s3584_s14 + $0x20] sm:$0xff] %v1934_v14  ;;  %v1857_v30 = vmul.f32 %v2738_v6, %v1761_v11  ;;  %v1797_v32 = vadd.f32 1e-12, %v1733_v7  ;;  %v1734_v35 = vsub.f32 %v1670_v33, %v1702_v21  ;;  %v3626_v36 = vmul.f32 0.0078125, %v1491_v29 }
 0x21f   : > { %v2740_v40 = vpop.eup %2739  ;;  %v1493_v22 = vpop.xlane.xlu1 %1492 }
 0x220   : > { %v1896_v37 = vmul.f32 %v3566_v12, %v1857_v30  ;;  %v1858_v39 = vmul.f32 %v2740_v40, %v1762_v25  ;;  %2745 = vrsqrt.f32 %v1797_v32  ;;  %v1798_v44 = vadd.f32 1e-12, %v1734_v35 }
 0x221   : > { %v1703_v47 = vmul.f32 %v3626_v36, %v3626_v36  ;;  %v3631_v61 = vmul.f32 0.0078125, %v1493_v22  ;;  %v1619_v46 = vpop.xlane.xlu0 %1618  ;;  %v1765_v35 = vsub.f32 %v3375_v19, %v3608_v50 }
 0x222   : > { %v1935_v31 = vadd.f32 %v3575_v51, %v1896_v37  ;;  %v1897_v24 = vmul.f32 %v3566_v12, %v1858_v39  ;;  %2747 = vrsqrt.f32 %v1798_v44  ;;  %v1671_v20 = vmul.f32 0.0078125, %v1619_v46 }
 0x223   : > { %v1621_v56 = vpop.xlane.xlu1 %1620  ;;  %v1704_v58 = vmul.f32 %v3631_v61, %v3631_v61  ;;  %v1766_v46 = vsub.f32 %v3380_v27, %v3613_v63 }
 0x224   : > { %1967 = vst [vmem:[%s3584_s14 + $0x28] sm:$0xff] %v1935_v31  ;;  %v1936_v57 = vadd.f32 %v3575_v51, %v1897_v24  ;;  %v1735_v60 = vsub.f32 %v1671_v20, %v1703_v47  ;;  %v1672_v26 = vmul.f32 0.0078125, %v1621_v56 }
 0x225   : > { %v2742_v54 = vpop.eup %2741  ;;  %v1495_v5 = vpop.xlane.xlu0 %1494 }
 0x226   : > { %1968 = vst [vmem:[%s3584_s14 + $0x30] sm:$0xff] %v1936_v57  ;;  %v1859_v11 = vmul.f32 %v2742_v54, %v1763_v45  ;;  %v1799_v13 = vadd.f32 1e-12, %v1735_v60  ;;  %v1736_v14 = vsub.f32 %v1672_v26, %v1704_v58  ;;  %v3644_v21 = vmul.f32 0.0078125, %v1495_v5 }
 0x227   : > { %v2744_v62 = vpop.eup %2743  ;;  %v1497_v0 = vpop.xlane.xlu1 %1496 }
 0x228   : > { %v1898_v7 = vmul.f32 %v3566_v12, %v1859_v11  ;;  %v1860_v33 = vmul.f32 %v2744_v62, %v1764_v3  ;;  %2749 = vrsqrt.f32 %v1799_v13  ;;  %v1800_v6 = vadd.f32 1e-12, %v1736_v14 }
 0x229   : > { %v1705_v25 = vmul.f32 %v3644_v21, %v3644_v21  ;;  %v3649_v29 = vmul.f32 0.0078125, %v1497_v0  ;;  %v1623_v4 = vpop.xlane.xlu0 %1622  ;;  %v1767_v11 = vsub.f32 %v3391_v42, %v3626_v36 }
 0x22a   : > { %v1937_v16 = vadd.f32 %v3575_v51, %v1898_v7  ;;  %v1899_v30 = vmul.f32 %v3566_v12, %v1860_v33  ;;  %2751 = vrsqrt.f32 %v1800_v6  ;;  %v1673_v32 = vmul.f32 0.0078125, %v1623_v4 }
 0x22b   : > { %v1625_v40 = vpop.xlane.xlu1 %1624  ;;  %v1706_v37 = vmul.f32 %v3649_v29, %v3649_v29  ;;  %v1768_v6 = vsub.f32 %v3396_v49, %v3631_v61 }
 0x22c   : > { %1969 = vst [vmem:[%s3584_s14 + $0x38] sm:$0xff] %v1937_v16  ;;  %v1938_v22 = vadd.f32 %v3575_v51, %v1899_v30  ;;  %v1737_v39 = vsub.f32 %v1673_v32, %v1705_v25  ;;  %v1674_v44 = vmul.f32 0.0078125, %v1625_v40 }
 0x22d   : > { %v2746_v47 = vpop.eup %2745  ;;  %v1499_v31 = vpop.xlane.xlu0 %1498 }
 0x22e   : > { %1970 = vst [vmem:[%s3584_s14 + $0x40] sm:$0xff] %v1938_v22  ;;  %v1861_v24 = vmul.f32 %v2746_v47, %v1765_v35  ;;  %v1801_v20 = vadd.f32 1e-12, %v1737_v39  ;;  %v1738_v45 = vsub.f32 %v1674_v44, %v1706_v37  ;;  %v3662_v56 = vmul.f32 0.0078125, %v1499_v31 }
 0x22f   : > { %v2748_v19 = vpop.eup %2747  ;;  %v1501_v50 = vpop.xlane.xlu1 %1500 }
 0x230   : > { %v1900_v57 = vmul.f32 %v3566_v12, %v1861_v24  ;;  %v1862_v58 = vmul.f32 %v2748_v19, %v1766_v46  ;;  %2753 = vrsqrt.f32 %v1801_v20  ;;  %v1802_v60 = vadd.f32 1e-12, %v1738_v45 }
 0x231   : > { %v1707_v26 = vmul.f32 %v3662_v56, %v3662_v56  ;;  %v3667_v54 = vmul.f32 0.0078125, %v1501_v50  ;;  %v1627_v27 = vpop.xlane.xlu0 %1626  ;;  %v1769_v46 = vsub.f32 %v3407_v2, %v3644_v21 }
 0x232   : > { %v1939_v63 = vadd.f32 %v3575_v51, %v1900_v57  ;;  %v1901_v3 = vmul.f32 %v3566_v12, %v1862_v58  ;;  %2755 = vrsqrt.f32 %v1802_v60  ;;  %v1675_v5 = vmul.f32 0.0078125, %v1627_v27 }
 0x233   : > { %v1629_v13 = vpop.xlane.xlu1 %1628  ;;  %v1708_v62 = vmul.f32 %v3667_v54, %v3667_v54  ;;  %v1770_v57 = vsub.f32 %v3412_v10, %v3649_v29 }
 0x234   : > { %1971 = vst [vmem:[%s3584_s14 + $0x48] sm:$0xff] %v1939_v63  ;;  %v1940_v14 = vadd.f32 %v3575_v51, %v1901_v3  ;;  %v1739_v0 = vsub.f32 %v1675_v5, %v1707_v26  ;;  %v1676_v7 = vmul.f32 0.0078125, %v1629_v13 }
 0x235   : > { %v2750_v33 = vpop.eup %2749  ;;  %v1503_v25 = vpop.xlane.xlu0 %1502 }
 0x236   : > { %1972 = vst [vmem:[%s3584_s14 + $0x50] sm:$0xff] %v1940_v14  ;;  %v1863_v4 = vmul.f32 %v2750_v33, %v1767_v11  ;;  %v1803_v16 = vadd.f32 1e-12, %v1739_v0  ;;  %v1740_v30 = vsub.f32 %v1676_v7, %v1708_v62  ;;  %v3680_v32 = vmul.f32 0.0078125, %v1503_v25 }
 0x237   : > { %v2752_v42 = vpop.eup %2751  ;;  %v1505_v36 = vpop.xlane.xlu1 %1504  ;;  %v1771_v7 = vsub.f32 %v3423_v28, %v3662_v56 }
 0x238   : > { %v1902_v35 = vmul.f32 %v3566_v12, %v1863_v4  ;;  %v1864_v40 = vmul.f32 %v2752_v42, %v1768_v6  ;;  %2757 = vrsqrt.f32 %v1803_v16  ;;  %v1804_v22 = vadd.f32 1e-12, %v1740_v30 }
 0x239   : > { %v1709_v37 = vmul.f32 %v3680_v32, %v3680_v32  ;;  %v3685_v39 = vmul.f32 0.0078125, %v1505_v36  ;;  %v1631_v49 = vpop.xlane.xlu0 %1630  ;;  %v1772_v42 = vsub.f32 %v3428_v34, %v3667_v54 }
 0x23a   : > { %v1941_v61 = vadd.f32 %v3575_v51, %v1902_v35  ;;  %v1903_v44 = vmul.f32 %v3566_v12, %v1864_v40  ;;  %2759 = vrsqrt.f32 %v1804_v22  ;;  %v1677_v47 = vmul.f32 0.0078125, %v1631_v49 }
 0x23b   : > { %v1633_v31 = vpop.xlane.xlu1 %1632  ;;  %v1710_v20 = vmul.f32 %v3685_v39, %v3685_v39 }
 0x23c   : > { %1973 = vst [vmem:[%s3584_s14 + $0x58] sm:$0xff] %v1941_v61  ;;  %v1942_v24 = vadd.f32 %v3575_v51, %v1903_v44  ;;  %v1741_v45 = vsub.f32 %v1677_v47, %v1709_v37  ;;  %v1678_v19 = vmul.f32 0.0078125, %v1633_v31 }
 0x23d   : > { %v2754_v50 = vpop.eup %2753  ;;  %v1507_v58 = vpop.xlane.xlu0 %1506 }
 0x23e   : > { %1974 = vst [vmem:[%s3584_s14 + $0x60] sm:$0xff] %v1942_v24  ;;  %v1865_v60 = vmul.f32 %v2754_v50, %v1769_v46  ;;  %v1805_v26 = vadd.f32 1e-12, %v1741_v45  ;;  %v1742_v27 = vsub.f32 %v1678_v19, %v1710_v20  ;;  %v3698_v63 = vmul.f32 0.0078125, %v1507_v58 }
 0x23f   : > { %v2756_v2 = vpop.eup %2755  ;;  %v1509_v21 = vpop.xlane.xlu1 %1508  ;;  %v1773_v20 = vsub.f32 %v3439_v53, %v3680_v32 }
 0x240   : > { %v1904_v3 = vmul.f32 %v3566_v12, %v1865_v60  ;;  %v1866_v5 = vmul.f32 %v2756_v2, %v1770_v57  ;;  %2761 = vrsqrt.f32 %v1805_v26  ;;  %v1806_v11 = vadd.f32 1e-12, %v1742_v27 }
 0x241   : > { %v1711_v13 = vmul.f32 %v3698_v63, %v3698_v63  ;;  %v3703_v14 = vmul.f32 0.0078125, %v1509_v21  ;;  %v1635_v10 = vpop.xlane.xlu0 %1634  ;;  %v1774_v26 = vsub.f32 %v3444_v59, %v3685_v39 }
 0x242   : > { %v1943_v29 = vadd.f32 %v3575_v51, %v1904_v3  ;;  %v1905_v62 = vmul.f32 %v3566_v12, %v1866_v5  ;;  %2763 = vrsqrt.f32 %v1806_v11  ;;  %v1679_v0 = vmul.f32 0.0078125, %v1635_v10 }
 0x243   : > { %v1637_v33 = vpop.xlane.xlu1 %1636  ;;  %v1712_v25 = vmul.f32 %v3703_v14, %v3703_v14 }
 0x244   : > { %1975 = vst [vmem:[%s3584_s14 + $0x68] sm:$0xff] %v1943_v29  ;;  %v1944_v6 = vadd.f32 %v3575_v51, %v1905_v62  ;;  %v1743_v4 = vsub.f32 %v1679_v0, %v1711_v13  ;;  %v1680_v16 = vmul.f32 0.0078125, %v1637_v33  ;;  %v1775_v33 = vsub.f32 %v3455_v15, %v3698_v63 }
 0x245   : > { %v2758_v30 = vpop.eup %2757  ;;  %v1511_v36 = vpop.xlane.xlu0 %1510 }
 0x246   : > { %1976 = vst [vmem:[%s3584_s14 + $0x70] sm:$0xff] %v1944_v6  ;;  %v1867_v35 = vmul.f32 %v2758_v30, %v1771_v7  ;;  %v1807_v40 = vadd.f32 1e-12, %v1743_v4  ;;  %v1744_v22 = vsub.f32 %v1680_v16, %v1712_v25  ;;  %v3716_v37 = vmul.f32 0.0078125, %v1511_v36 }
 0x247   : > { %v2760_v28 = vpop.eup %2759  ;;  %v1513_v56 = vpop.xlane.xlu1 %1512  ;;  %v1776_v36 = vsub.f32 %v3460_v23, %v3703_v14 }
 0x248   : > { %v1906_v49 = vmul.f32 %v3566_v12, %v1867_v35  ;;  %v1868_v61 = vmul.f32 %v2760_v28, %v1772_v42  ;;  %2765 = vrsqrt.f32 %v1807_v40  ;;  %v1808_v44 = vadd.f32 1e-12, %v1744_v22 }
 0x249   : > { %v1713_v47 = vmul.f32 %v3716_v37, %v3716_v37  ;;  %v3721_v46 = vmul.f32 0.0078125, %v1513_v56  ;;  %v1639_v34 = vpop.xlane.xlu0 %1638 }
 0x24a   : > { %v1945_v54 = vadd.f32 %v3575_v51, %v1906_v49  ;;  %v1907_v31 = vmul.f32 %v3566_v12, %v1868_v61  ;;  %2767 = vrsqrt.f32 %v1808_v44  ;;  %v1681_v24 = vmul.f32 0.0078125, %v1639_v34 }
 0x24b   : > { %v1641_v45 = vpop.xlane.xlu1 %1640  ;;  %v1714_v50 = vmul.f32 %v3721_v46, %v3721_v46 }
 0x24c   : > { %1977 = vst [vmem:[%s3584_s14 + $0x78] sm:$0xff] %v1945_v54  ;;  %v1946_v19 = vadd.f32 %v3575_v51, %v1907_v31  ;;  %v1745_v57 = vsub.f32 %v1681_v24, %v1713_v47  ;;  %v1682_v58 = vmul.f32 0.0078125, %v1641_v45  ;;  %v1777_v24 = vsub.f32 %v3471_v43, %v3716_v37 }
 0x24d   : > { %v2762_v60 = vpop.eup %2761  ;;  %v1515_v27 = vpop.xlane.xlu0 %1514 }
 0x24e   : > { %1978 = vst [vmem:[%s3584_s14 + $0x80] sm:$0xff] %v1946_v19  ;;  %v1869_v2 = vmul.f32 %v2762_v60, %v1773_v20  ;;  %v1809_v21 = vadd.f32 1e-12, %v1745_v57  ;;  %v1746_v3 = vsub.f32 %v1682_v58, %v1714_v50  ;;  %v3734_v5 = vmul.f32 0.0078125, %v1515_v27 }
 0x24f   : > { %v2764_v53 = vpop.eup %2763  ;;  %v1517_v32 = vpop.xlane.xlu1 %1516  ;;  %v1778_v60 = vsub.f32 %v3476_v52, %v3721_v46 }
 0x250   : > { %v1908_v11 = vmul.f32 %v3566_v12, %v1869_v2  ;;  %v1870_v13 = vmul.f32 %v2764_v53, %v1774_v26  ;;  %2769 = vrsqrt.f32 %v1809_v21  ;;  %v1810_v10 = vadd.f32 1e-12, %v1746_v3 }
 0x251   : > { %v1715_v29 = vmul.f32 %v3734_v5, %v3734_v5  ;;  %v3739_v62 = vmul.f32 0.0078125, %v1517_v32  ;;  %v1643_v59 = vpop.xlane.xlu0 %1642 }
 0x252   : > { %v1947_v39 = vadd.f32 %v3575_v51, %v1908_v11  ;;  %v1909_v0 = vmul.f32 %v3566_v12, %v1870_v13  ;;  %2771 = vrsqrt.f32 %v1810_v10  ;;  %v1683_v7 = vmul.f32 0.0078125, %v1643_v59 }
 0x253   : > { %v1645_v6 = vpop.xlane.xlu1 %1644  ;;  %v1716_v4 = vmul.f32 %v3739_v62, %v3739_v62 }
 0x254   : > { %1979 = vst [vmem:[%s3584_s14 + $0x88] sm:$0xff] %v1947_v39  ;;  %v1948_v25 = vadd.f32 %v3575_v51, %v1909_v0  ;;  %v1747_v16 = vsub.f32 %v1683_v7, %v1715_v29  ;;  %v1684_v30 = vmul.f32 0.0078125, %v1645_v6  ;;  %v1779_v39 = vsub.f32 %v3487_v9, %v3734_v5 }
 0x255   : > { %v2766_v42 = vpop.eup %2765  ;;  %v1519_v35 = vpop.xlane.xlu0 %1518 }
 0x256   : > { %1980 = vst [vmem:[%s3584_s14 + $0x90] sm:$0xff] %v1948_v25  ;;  %v1871_v40 = vmul.f32 %v2766_v42, %v1775_v33  ;;  %v1811_v22 = vadd.f32 1e-12, %v1747_v16  ;;  %v1748_v28 = vsub.f32 %v1684_v30, %v1716_v4  ;;  %v3752_v56 = vmul.f32 0.0078125, %v1519_v35 }
 0x257   : > { %v2768_v15 = vpop.eup %2767  ;;  %v1521_v63 = vpop.xlane.xlu1 %1520  ;;  %v1780_v16 = vsub.f32 %v3492_v17, %v3739_v62 }
 0x258   : > { %v1910_v49 = vmul.f32 %v3566_v12, %v1871_v40  ;;  %v1872_v61 = vmul.f32 %v2768_v15, %v1776_v36  ;;  %2773 = vrsqrt.f32 %v1811_v22  ;;  %v1812_v44 = vadd.f32 1e-12, %v1748_v28 }
 0x259   : > { %v1717_v47 = vmul.f32 %v3752_v56, %v3752_v56  ;;  %v3757_v34 = vmul.f32 0.0078125, %v1521_v63  ;;  %v1647_v23 = vpop.xlane.xlu0 %1646 }
 0x25a   : > { %v1949_v14 = vadd.f32 %v3575_v51, %v1910_v49  ;;  %v1911_v54 = vmul.f32 %v3566_v12, %v1872_v61  ;;  %2775 = vrsqrt.f32 %v1812_v44  ;;  %v1685_v31 = vmul.f32 0.0078125, %v1647_v23 }
 0x25b   : > { %v1649_v20 = vpop.xlane.xlu1 %1648  ;;  %v1718_v19 = vmul.f32 %v3757_v34, %v3757_v34 }
 0x25c   : > { %1981 = vst [vmem:[%s3584_s14 + $0x98] sm:$0xff] %v1949_v14  ;;  %v1950_v45 = vadd.f32 %v3575_v51, %v1911_v54  ;;  %v1749_v50 = vsub.f32 %v1685_v31, %v1717_v47  ;;  %v1686_v57 = vmul.f32 0.0078125, %v1649_v20  ;;  %v1781_v47 = vsub.f32 %v3503_v38, %v3752_v56 }
 0x25d   : > { %v2770_v58 = vpop.eup %2769  ;;  %v1523_v26 = vpop.xlane.xlu0 %1522 }
 0x25e   : > { %1982 = vst [vmem:[%s3584_s14 + $0xa0] sm:$0xff] %v1950_v45  ;;  %v1873_v27 = vmul.f32 %v2770_v58, %v1777_v24  ;;  %v1813_v2 = vadd.f32 1e-12, %v1749_v50  ;;  %v1750_v21 = vsub.f32 %v1686_v57, %v1718_v19  ;;  %v3770_v3 = vmul.f32 0.0078125, %v1523_v26 }
 0x25f   : > { %v2772_v43 = vpop.eup %2771  ;;  %v1525_v37 = vpop.xlane.xlu1 %1524  ;;  %v1782_v45 = vsub.f32 %v3508_v48, %v3757_v34 }
 0x260   : > { %v1912_v53 = vmul.f32 %v3566_v12, %v1873_v27  ;;  %v1874_v32 = vmul.f32 %v2772_v43, %v1778_v60  ;;  %2777 = vrsqrt.f32 %v1813_v2  ;;  %v1814_v11 = vadd.f32 1e-12, %v1750_v21 }
 0x261   : > { %v1719_v13 = vmul.f32 %v3770_v3, %v3770_v3  ;;  %v3775_v10 = vmul.f32 0.0078125, %v1525_v37  ;;  %v1651_v52 = vpop.xlane.xlu0 %1650 }
 0x262   : > { %v1951_v46 = vadd.f32 %v3575_v51, %v1912_v53  ;;  %v1913_v29 = vmul.f32 %v3566_v12, %v1874_v32  ;;  %2779 = vrsqrt.f32 %v1814_v11  ;;  %v1687_v59 = vmul.f32 0.0078125, %v1651_v52 }
 0x263   : > { %v1653_v0 = vpop.xlane.xlu1 %1652  ;;  %v1720_v33 = vmul.f32 %v3775_v10, %v3775_v10  ;;  %v1783_v53 = vsub.f32 %v3519_v8, %v3770_v3 }
 0x264   : > { %1983 = vst [vmem:[%s3584_s14 + $0xa8] sm:$0xff] %v1951_v46  ;;  %v1952_v7 = vadd.f32 %v3575_v51, %v1913_v29  ;;  %v1751_v6 = vsub.f32 %v1687_v59, %v1719_v13  ;;  %v1688_v25 = vmul.f32 0.0078125, %v1653_v0  ;;  %v1784_v13 = vsub.f32 %v3524_v18, %v3775_v10 }
 0x265   : > { %v2774_v4 = vpop.eup %2773  ;;  %v1527_v30 = vpop.xlane.xlu0 %1526 }
 0x266   : > { %1984 = vst [vmem:[%s3584_s14 + $0xb0] sm:$0xff] %v1952_v7  ;;  %v1875_v42 = vmul.f32 %v2774_v4, %v1779_v39  ;;  %v1815_v36 = vadd.f32 1e-12, %v1751_v6  ;;  %v1752_v35 = vsub.f32 %v1688_v25, %v1720_v33  ;;  %v1561_v40 = vmul.f32 0.0078125, %v1527_v30 }
 0x267   : > { %v2776_v9 = vpop.eup %2775  ;;  %v1529_v5 = vpop.xlane.xlu1 %1528 }
 0x268   : > { %v1914_v22 = vmul.f32 %v3566_v12, %v1875_v42  ;;  %v1876_v28 = vmul.f32 %v2776_v9, %v1780_v16  ;;  %2781 = vrsqrt.f32 %v1815_v36  ;;  %v1816_v15 = vadd.f32 1e-12, %v1752_v35 }
 0x269   : > { %v1721_v63 = vmul.f32 %v1561_v40, %v1561_v40  ;;  %v1562_v49 = vmul.f32 0.0078125, %v1529_v5  ;;  %v1655_v61 = vpop.xlane.xlu0 %1654  ;;  %v1785_v3 = vsub.f32 %v3535_v41, %v1561_v40 }
 0x26a   : > { %v1953_v17 = vadd.f32 %v3575_v51, %v1914_v22  ;;  %v1915_v62 = vmul.f32 %v3566_v12, %v1876_v28  ;;  %2783 = vrsqrt.f32 %v1816_v15  ;;  %v1689_v44 = vmul.f32 0.0078125, %v1655_v61 }
 0x26b   : > { %v1657_v23 = vpop.xlane.xlu1 %1656  ;;  %v1722_v54 = vmul.f32 %v1562_v49, %v1562_v49  ;;  %v1786_v10 = vsub.f32 %v3540_v55, %v1562_v49 }
 0x26c   : > { %1985 = vst [vmem:[%s3584_s14 + $0xb8] sm:$0xff] %v1953_v17  ;;  %v1954_v14 = vadd.f32 %v3575_v51, %v1915_v62  ;;  %v1753_v31 = vsub.f32 %v1689_v44, %v1721_v63  ;;  %v1690_v24 = vmul.f32 0.0078125, %v1657_v23 }
 0x26d   : > { %v2778_v20 = vpop.eup %2777  ;;  %v1531_v19 = vpop.xlane.xlu0 %1530 }
 0x26e   : > { %1986 = vst [vmem:[%s3584_s14 + $0xc0] sm:$0xff] %v1954_v14  ;;  %v1877_v50 = vmul.f32 %v2778_v20, %v1781_v47  ;;  %v1817_v57 = vadd.f32 1e-12, %v1753_v31  ;;  %v1754_v58 = vsub.f32 %v1690_v24, %v1722_v54  ;;  %v1563_v60 = vmul.f32 0.0078125, %v1531_v19 }
 0x26f   : > { %v2780_v26 = vpop.eup %2779 }
 0x270   : > { %v1916_v38 = vmul.f32 %v3566_v12, %v1877_v50  ;;  %v1878_v56 = vmul.f32 %v2780_v26, %v1782_v45  ;;  %2785 = vrsqrt.f32 %v1817_v57  ;;  %v1818_v27 = vadd.f32 1e-12, %v1754_v58 }
 0x271   : > { %v1723_v2 = vmul.f32 %v1563_v60, %v1563_v60  ;;  %v1659_v21 = vpop.xlane.xlu0 %1658  ;;  %v1787_v42 = vsub.f32 %v3548_v1, %v1563_v60 }
 0x272   : > { %v1955_v43 = vadd.f32 %v3575_v51, %v1916_v38  ;;  %v1917_v48 = vmul.f32 %v3566_v12, %v1878_v56  ;;  %2787 = vrsqrt.f32 %v1818_v27  ;;  %v1691_v34 = vmul.f32 0.0078125, %v1659_v21 }
 0x274   : > { %1987 = vst [vmem:[%s3584_s14 + $0xc8] sm:$0xff] %v1955_v43  ;;  %v1956_v37 = vadd.f32 %v3575_v51, %v1917_v48  ;;  %v1755_v32 = vsub.f32 %v1691_v34, %v1723_v2 }
 0x275   : > { %v2782_v11 = vpop.eup %2781 }
 0x276   : > { %1988 = vst [vmem:[%s3584_s14 + $0xd0] sm:$0xff] %v1956_v37  ;;  %v1879_v52 = vmul.f32 %v2782_v11, %v1783_v53  ;;  %v1819_v46 = vadd.f32 1e-12, %v1755_v32 }
 0x277   : > { %v2784_v29 = vpop.eup %2783 }
 0x278   : > { %v1918_v59 = vmul.f32 %v3566_v12, %v1879_v52  ;;  %v1880_v39 = vmul.f32 %v2784_v29, %v1784_v13  ;;  %2789 = vrsqrt.f32 %v1819_v46 }
 0x27a   : > { %v1957_v0 = vadd.f32 %v3575_v51, %v1918_v59  ;;  %v1919_v7 = vmul.f32 %v3566_v12, %v1880_v39 }
 0x27c   : > { %1989 = vst [vmem:[%s3584_s14 + $0xd8] sm:$0xff] %v1957_v0  ;;  %v1958_v8 = vadd.f32 %v3575_v51, %v1919_v7 }
 0x27d   : > { %v2786_v18 = vpop.eup %2785 }
 0x27e   : > { %1990 = vst [vmem:[%s3584_s14 + $0xe0] sm:$0xff] %v1958_v8  ;;  %v1881_v33 = vmul.f32 %v2786_v18, %v1785_v3 }
 0x27f   : > { %v2788_v6 = vpop.eup %2787 }
 0x280   : > { %v1920_v25 = vmul.f32 %v3566_v12, %v1881_v33  ;;  %v1882_v4 = vmul.f32 %v2788_v6, %v1786_v10 }
 0x282   : > { %v1959_v16 = vadd.f32 %v3575_v51, %v1920_v25  ;;  %v1921_v30 = vmul.f32 %v3566_v12, %v1882_v4 }
 0x284   : > { %1991 = vst [vmem:[%s3584_s14 + $0xe8] sm:$0xff] %v1959_v16  ;;  %v1960_v41 = vadd.f32 %v3575_v51, %v1921_v30 }
 0x285   : > { %v2790_v36 = vpop.eup %2789 }
 0x286   : > { %1992 = vst [vmem:[%s3584_s14 + $0xf0] sm:$0xff] %v1960_v41  ;;  %v1883_v55 = vmul.f32 %v2790_v36, %v1787_v42 }
 0x288   : > { %v1922_v35 = vmul.f32 %v3566_v12, %v1883_v55 }
 0x28a   : > { %v1961_v40 = vadd.f32 %v3575_v51, %v1922_v35 }
 0x28c   : > { %1993 = vst [vmem:[%s3584_s14 + $0xf8] sm:$0xff] %v1961_v40 }
 0x28d   : > { %2804 = shalt.err (!%p2801_p5)
}
 0x28e   : > { %s2805_s8 = scalar_lea.hbm %s3829_s25, 4096  ;;  %s2809_s12 = scalar_lea.hbm %s3887_s5, 8192 }
 0x28f   : > { %p2806_p6 = scmp.ne.s32.totalorder %s3829_s25, %s2805_s8  ;;  %p2810_p10 = scmp.lt.s32.totalorder %s3829_s25, %s3887_s5 }
 0x290   : > { %p2811_p11 = scmp.lt.s32.totalorder %s2809_s12, %s2805_s8 }
 0x291   : > { %p2807_p7 = pnand %p2806_p6, %p2944_p4 }
 0x292   : > { %p2812_p12 = por %p2811_p11, %p2810_p10 }
 0x293   : > { %p2808_p9 = pneg %p2807_p7 }
 0x295   : > { %p2813_p13 = pnand %p2812_p12, %p2808_p9 }
 0x297   : > { %2816 = shalt.err (!%p2813_p13)
}
 0x298   : > { %s2872_s15 = smov 128   ;;  %s2873_s17 = smov 8  }
 0x299   : > { %2634 = dma.vmem_to_hbm [thread:$0]  (%p2944_p4), %s3831_s16, 4096, %s3829_s25, %s3837_s27, %s2872_s15, %s2872_s15, %s2873_s17  }
 0x29a PF: > { %p2640_p0 = scmp.ge.s32.totalorder %s2867_s23, 2  ;;  %s2025_s24 = sand.u32 1, %s2847_s18  }
 0x29b   : > { %s2026_s21 = scalar_lea.sflag [#allocation3], %s2025_s24 }
 0x29c   : > { %p2637_p1 = pnand %p2640_p0, %p2951_p8 }
 0x29e   : > { %p2638_p2 = pneg %p2637_p1 }
 0x2a0   : > { %2842 = dma.done.wait (%p2638_p2), %s2026_s21, 4096  }
 0x2a1   : > { %2844 = vsyncadd (%p2638_p2), %s2026_s21, 4294963200  ;;  %s18_s23 = sadd.s32 1, %s2867_s23   ;;  %s3890_s18 = smov %s2851_s19 }
 0x2a2   : > { %p15_p3 = scmp.ge.s32.totalorder %s18_s23, 4   ;;  %s3891_s19 = smov %s2855_s20 }
 0x2a3   : > { %s3892_s20 = smov %s2957_s6  ;;  %s3893_s21 = smov %s2863_s22 }
 0x2a4   : > { %s3894_s22 = smov %s3896_s26  ;;  %17 = sbr.rel (!%p15_p3) target bundleno = 4 (0x4), region = 78 }
 0x2a9   :  { %2031 = vsyncpa [#allocation3], 1 }
 0x2aa   :  { %2033 = vsyncpa [#allocation3 + $0x1], 1 }

</bundles_post_ra>
